<compile_context>
chip_gen: v6e
topology: v6e:2x2x1
jax: 0.10.0
libtpu: 0.0.40
codegen_flags: <defaults>
</compile_context>

<pallas_src>
import functools

import jax
import jax.numpy as jnp
import numpy as np
from jax.experimental import pallas as pl
from jax.experimental.pallas import tpu as pltpu

# ----- model hyper-parameters (consistent with the module's globals) ---------
EMBEDDING_DIM = 128
HEAD_NUM = 4
KEY_DIM = 32                      # HEAD_NUM * KEY_DIM == EMBEDDING_DIM
FF_HIDDEN_DIM = 256
BN_EPS = 1e-5
_NEG_INF = -1e30                  # finite "-inf" for masked key logits


def _spec(shape):
    """Full-array block (block == array shape) for a grid=(1,) kernel."""
    nd = len(shape)
    return pl.BlockSpec(shape, lambda i, _nd=nd: (0,) * _nd)


# ----------------------------- kernel ----------------------------------------
def _encoder_layer_kernel(x_ref, wq_ref, wk_ref, wv_ref, wc_ref, bc_ref,
                          g1_ref, be1_ref, w1_ref, b1_ref, w2_ref, b2_ref,
                          g2_ref, be2_ref, o_ref, *, B, N_valid, N_pad):
    f32 = jnp.float32
    bf16 = jnp.bfloat16
    H, K, E = HEAD_NUM, KEY_DIM, EMBEDDING_DIM
    HK = H * K
    M = B * N_pad
    padded = (N_pad != N_valid)
    scale = 1.0 / float(np.sqrt(K))

    x = x_ref[...]                                   # (M, E) f32 residual path
    xb = x.astype(bf16)

    # --- Q, K, V projections (bias-free Linear): bf16 operands, f32 accum ---
    # 1/sqrt(K) is folded into q here instead of scaling the (B,H,N,N) scores.
    q = jnp.dot(xb, wq_ref[...], preferred_element_type=f32) * scale
    k = jnp.dot(xb, wk_ref[...], preferred_element_type=f32)
    v = jnp.dot(xb, wv_ref[...], preferred_element_type=f32)

    # Single bf16 cast per tensor; leading-dim-only reshape (layout free).
    q3 = q.astype(bf16).reshape(B, N_pad, HK)
    k3 = k.astype(bf16).reshape(B, N_pad, HK)
    v3 = v.astype(bf16).reshape(B, N_pad, HK)

    # Head-major batched layout (H*B, N, K): one static lane-slice per head and
    # a single leading-axis concat; all attention matmuls below are two
    # batched einsums instead of a per-head loop of tiny dot_generals.
    def head_major(t3):
        return jnp.concatenate(
            [t3[:, :, h * K:(h + 1) * K] for h in range(H)], axis=0)

    qh = head_major(q3)                              # (H*B, N_pad, K) bf16
    kh = head_major(k3)
    vh = head_major(v3)

    # --- scores + softmax (f32) ----------------------------------------------
    s = jnp.einsum('gnk,gmk->gnm', qh, kh,
                   preferred_element_type=f32)       # (H*B, N_pad, N_pad)
    if padded:                                       # mask padded key columns
        kidx = jax.lax.broadcasted_iota(jnp.int32, (1, 1, N_pad), 2)
        s = jnp.where(kidx < N_valid, s, _NEG_INF)
    mx = jnp.max(s, axis=-1, keepdims=True)
    p = jnp.exp(s - mx)
    attn = (p / jnp.sum(p, axis=-1, keepdims=True)).astype(bf16)

    o = jnp.einsum('gnm,gmk->gnk', attn, vh,
                   preferred_element_type=f32)       # (H*B, N_pad, K) f32

    # Lane-concat the head outputs into a lane-dense (M, 128) tensor and run a
    # single 128-deep combine matmul (instead of 4 K=32 partial matmuls).
    oc = jnp.concatenate(
        [o[h * B:(h + 1) * B].reshape(M, K) for h in range(H)],
        axis=-1).astype(bf16)                        # (M, HK=128)
    mh = jnp.dot(oc, wc_ref[...], preferred_element_type=f32) + bc_ref[...]

    # --- Add & BatchNorm1d (training-mode batch stats, biased variance) ------
    if padded:
        ridx = jax.lax.broadcasted_iota(jnp.int32, (B, N_pad, 1), 1)
        row_mask = (ridx < N_valid).astype(f32).reshape(M, 1)
        inv_rows = 1.0 / float(B * N_valid)
    else:
        row_mask = None
        inv_rows = 1.0 / float(M)

    def add_and_batchnorm(resid, delta, gamma, beta):
        a = resid + delta
        if row_mask is None:
            mean = jnp.sum(a, axis=0, keepdims=True) * inv_rows
            centered = a - mean                       # reused for var + norm
            var = jnp.sum(centered * centered, axis=0, keepdims=True) * inv_rows
        else:                                         # exclude padded rows
            mean = jnp.sum(a * row_mask, axis=0, keepdims=True) * inv_rows
            centered = a - mean
            var = jnp.sum(centered * centered * row_mask,
                          axis=0, keepdims=True) * inv_rows
        return centered * jax.lax.rsqrt(var + BN_EPS) * gamma + beta

    out1 = add_and_batchnorm(x, mh, g1_ref[...], be1_ref[...])

    # --- Feed forward: W2(relu(W1(x))) ---------------------------------------
    h1 = jnp.maximum(
        jnp.dot(out1.astype(bf16), w1_ref[...], preferred_element_type=f32)
        + b1_ref[...], 0.0)
    ff = (jnp.dot(h1.astype(bf16), w2_ref[...], preferred_element_type=f32)
          + b2_ref[...])

    # --- Add & BatchNorm1d #2 -------------------------------------------------
    o_ref[...] = add_and_batchnorm(out1, ff, g2_ref[...], be2_ref[...])


# ----------------------------- wrapper ----------------------------------------
def _cost_estimate(B, N_pad):
    M = B * N_pad
    E, HK, F, H, K = EMBEDDING_DIM, HEAD_NUM * KEY_DIM, FF_HIDDEN_DIM, HEAD_NUM, KEY_DIM
    flops = (3 * 2 * M * E * HK                 # q, k, v projections
             + 2 * 2 * B * H * N_pad * N_pad * K  # scores + weighted sum
             + 2 * M * HK * E                   # multi_head_combine
             + 2 * M * E * F + 2 * M * F * E)   # feed-forward
    transcendentals = B * H * N_pad * N_pad + 2 * E   # softmax exp + BN rsqrt
    bytes_accessed = (2 * M * E * 4                                  # x in, out
                      + (3 * E * HK + HK * E + E * F + F * E) * 2    # bf16 weights
                      + (6 * E + F) * 4)                             # biases / BN affine
    return pl.CostEstimate(flops=flops, transcendentals=transcendentals,
                           bytes_accessed=bytes_accessed)


def prepare_params(params):
    """One-time parameter prep: bf16 copies of the matmul weights (halves their
    HBM footprint / DMA bytes).  Doing this once here — instead of per forward
    call — removes six per-call XLA convert ops that re-read the f32 weights
    from HBM.  Biases and BatchNorm affine params stay f32."""
    bf16 = jnp.bfloat16
    out = dict(params)
    for name in ("wq", "wk", "wv", "wc", "w1", "w2"):
        out[name] = params[name].astype(bf16)
    return out


def encoder_layer_forward(input1, prepared):
    """input1: (B, N, EMBEDDING_DIM) -> (B, N, EMBEDDING_DIM) f32.

    N is zero-padded up to a multiple of 8 (layout requirement); padded keys
    and padded BatchNorm rows are masked inside the kernel, so any POMO
    sequence length works.
    """
    B, N, E = input1.shape
    assert E == EMBEDDING_DIM
    N_pad = ((N + 7) // 8) * 8
    M = B * N_pad
    HK = HEAD_NUM * KEY_DIM

    x = input1.astype(jnp.float32)
    if N_pad != N:
        x = jnp.pad(x, ((0, 0), (0, N_pad - N), (0, 0)))
    x2 = x.reshape(M, E)

    kern = functools.partial(_encoder_layer_kernel, B=B, N_valid=N, N_pad=N_pad)
    out = pl.pallas_call(
        kern,
        out_shape=jax.ShapeDtypeStruct((M, E), jnp.float32),
        grid=(1,),
        in_specs=[
            _spec((M, E)),                    # x (f32)
            _spec((E, HK)),                   # wq (bf16)
            _spec((E, HK)),                   # wk (bf16)
            _spec((E, HK)),                   # wv (bf16)
            _spec((HK, E)),                   # wc (bf16)
            _spec((1, E)),                    # bc
            _spec((1, E)),                    # bn1 gamma
            _spec((1, E)),                    # bn1 beta
            _spec((E, FF_HIDDEN_DIM)),        # w1 (bf16)
            _spec((1, FF_HIDDEN_DIM)),        # b1
            _spec((FF_HIDDEN_DIM, E)),        # w2 (bf16)
            _spec((1, E)),                    # b2
            _spec((1, E)),                    # bn2 gamma
            _spec((1, E)),                    # bn2 beta
        ],
        out_specs=_spec((M, E)),              # lane-dense (last dim = 128)
        compiler_params=pltpu.CompilerParams(
            dimension_semantics=("arbitrary",),
            # Everything is VMEM-resident at these shapes; re-derive this if
            # the M-tiled grid (see TODO at top) is added.
            vmem_limit_bytes=32 * 1024 * 1024),
        cost_estimate=_cost_estimate(B, N_pad),
    )(x2, prepared["wq"], prepared["wk"], prepared["wv"], prepared["wc"],
      prepared["bc"], prepared["g1"], prepared["be1"], prepared["w1"],
      prepared["b1"], prepared["w2"], prepared["b2"], prepared["g2"],
      prepared["be2"])

    out = out.reshape(B, N_pad, E)
    if N_pad != N:
        out = out[:, :N, :]
    return out


# ----------------------------- params & reference ----------------------------
def _init_params(key):
    keys = iter(jax.random.split(key, 16))

    def lin_w(k, fan_in, fan_out):
        bound = 1.0 / float(np.sqrt(fan_in))
        return jax.random.uniform(k, (fan_in, fan_out), jnp.float32, -bound, bound)

    def lin_b(k, fan_in, fan_out):
        bound = 1.0 / float(np.sqrt(fan_in))
        return jax.random.uniform(k, (1, fan_out), jnp.float32, -bound, bound)

    HK = HEAD_NUM * KEY_DIM
    return {
        "wq": lin_w(next(keys), EMBEDDING_DIM, HK),
        "wk": lin_w(next(keys), EMBEDDING_DIM, HK),
        "wv": lin_w(next(keys), EMBEDDING_DIM, HK),
        "wc": lin_w(next(keys), HK, EMBEDDING_DIM),
        "bc": lin_b(next(keys), HK, EMBEDDING_DIM),
        "g1": jnp.ones((1, EMBEDDING_DIM), jnp.float32),   # BN affine defaults
        "be1": jnp.zeros((1, EMBEDDING_DIM), jnp.float32),
        "w1": lin_w(next(keys), EMBEDDING_DIM, FF_HIDDEN_DIM),
        "b1": lin_b(next(keys), EMBEDDING_DIM, FF_HIDDEN_DIM),
        "w2": lin_w(next(keys), FF_HIDDEN_DIM, EMBEDDING_DIM),
        "b2": lin_b(next(keys), FF_HIDDEN_DIM, EMBEDDING_DIM),
        "g2": jnp.ones((1, EMBEDDING_DIM), jnp.float32),
        "be2": jnp.zeros((1, EMBEDDING_DIM), jnp.float32),
    }


def _ref_forward(input1, lp, matmul_dtype=jnp.float32):
    """Pure-JAX reference mirroring the PyTorch forward.

    matmul_dtype=f32  -> exact PyTorch (f32) semantics.
    matmul_dtype=bf16 -> same cast points as the kernel (numerics-matched).
    Softmax and BatchNorm statistics are always f32.  The 1/sqrt(K) scale is
    folded into q (mathematically identical to dividing the scores).
    """
    B, N, E = input1.shape
    M = B * N
    HK = HEAD_NUM * KEY_DIM
    f32 = jnp.float32
    c = lambda a: a.astype(matmul_dtype)
    scale = 1.0 / float(np.sqrt(KEY_DIM))

    x = input1.reshape(M, E).astype(f32)
    q = jnp.dot(c(x), c(lp["wq"]), preferred_element_type=f32) * scale
    k = jnp.dot(c(x), c(lp["wk"]), preferred_element_type=f32)
    v = jnp.dot(c(x), c(lp["wv"]), preferred_element_type=f32)

    def heads(t):   # (M, HK) -> (B, H, N, K)
        return t.reshape(B, N, HEAD_NUM, KEY_DIM).transpose(0, 2, 1, 3)

    qh, kh, vh = heads(q), heads(k), heads(v)
    s = jnp.einsum("bhnk,bhmk->bhnm", c(qh), c(kh), preferred_element_type=f32)
    attn = jax.nn.softmax(s, axis=-1)
    o = jnp.einsum("bhnm,bhmk->bhnk", c(attn), c(vh), preferred_element_type=f32)
    out_concat = o.transpose(0, 2, 1, 3).reshape(M, HK)
    mh = jnp.dot(c(out_concat), c(lp["wc"]), preferred_element_type=f32) + lp["bc"]

    a1 = x + mh
    m1 = a1.mean(0, keepdims=True)
    v1 = ((a1 - m1) ** 2).mean(0, keepdims=True)
    o1 = (a1 - m1) * jax.lax.rsqrt(v1 + BN_EPS) * lp["g1"] + lp["be1"]

    h1 = jnp.maximum(
        jnp.dot(c(o1), c(lp["w1"]), preferred_element_type=f32) + lp["b1"], 0.0)
    ff = jnp.dot(c(h1), c(lp["w2"]), preferred_element_type=f32) + lp["b2"]

    a2 = o1 + ff
    m2 = a2.mean(0, keepdims=True)
    v2 = ((a2 - m2) ** 2).mean(0, keepdims=True)
    out = (a2 - m2) * jax.lax.rsqrt(v2 + BN_EPS) * lp["g2"] + lp["be2"]
    return out.reshape(B, N, E)


# ----------------------------- main -------------------------------------------
if __name__ == "__main__":
    key = jax.random.PRNGKey(0)
    pkey, xkey1, xkey2 = jax.random.split(key, 3)
    params = _init_params(pkey)
    prepared = prepare_params(params)          # one-time bf16 weight copies

    fwd = jax.jit(encoder_layer_forward)

    # ---- Case 1: B=2, N=8, E=128 (no padding path) ---------------------------
    B, N = 2, 8
    x1 = jax.random.normal(xkey1, (B, N, EMBEDDING_DIM), dtype=jnp.float32)
    out1 = jax.block_until_ready(fwd(x1, prepared))
    assert out1.shape == (B, N, EMBEDDING_DIM)
    np.testing.assert_allclose(np.asarray(out1),
                               np.asarray(_ref_forward(x1, params, jnp.bfloat16)),
                               rtol=3e-3, atol=3e-3)
    np.testing.assert_allclose(np.asarray(out1),
                               np.asarray(_ref_forward(x1, params, jnp.float32)),
                               rtol=3e-2, atol=3e-2)

    # ---- Case 2: B=2, N=6 (exercises the zero-pad + in-kernel masking path) --
    B2, N2 = 2, 6
    x2 = jax.random.normal(xkey2, (B2, N2, EMBEDDING_DIM), dtype=jnp.float32)
    out2 = jax.block_until_ready(fwd(x2, prepared))
    assert out2.shape == (B2, N2, EMBEDDING_DIM)
    np.testing.assert_allclose(np.asarray(out2),
                               np.asarray(_ref_forward(x2, params, jnp.bfloat16)),
                               rtol=3e-3, atol=3e-3)
    np.testing.assert_allclose(np.asarray(out2),
                               np.asarray(_ref_forward(x2, params, jnp.float32)),
                               rtol=3e-2, atol=3e-2)

    print("KERNEL_OK")
</pallas_src>

<mosaic_0001>
module attributes {stable_mosaic.version = 11 : i64} {
  func.func @_encoder_layer_kernel(%arg0: i32, %arg1: memref<16x128xf32, #tpu.memory_space<vmem>>, %arg2: memref<128x128xbf16, #tpu.memory_space<vmem>>, %arg3: memref<128x128xbf16, #tpu.memory_space<vmem>>, %arg4: memref<128x128xbf16, #tpu.memory_space<vmem>>, %arg5: memref<128x128xbf16, #tpu.memory_space<vmem>>, %arg6: memref<1x128xf32, #tpu.memory_space<vmem>>, %arg7: memref<1x128xf32, #tpu.memory_space<vmem>>, %arg8: memref<1x128xf32, #tpu.memory_space<vmem>>, %arg9: memref<128x256xbf16, #tpu.memory_space<vmem>>, %arg10: memref<1x256xf32, #tpu.memory_space<vmem>>, %arg11: memref<256x128xbf16, #tpu.memory_space<vmem>>, %arg12: memref<1x128xf32, #tpu.memory_space<vmem>>, %arg13: memref<1x128xf32, #tpu.memory_space<vmem>>, %arg14: memref<1x128xf32, #tpu.memory_space<vmem>>, %arg15: memref<16x128xf32, #tpu.memory_space<vmem>>) attributes {dimension_semantics = [#tpu.dimension_semantics<arbitrary>], iteration_bounds = array<i64: 1>, scalar_prefetch = 0 : i64, scratch_operands = 0 : i64, tpu.core_type = #tpu.core_type<tc>, window_params = [{pipeline_mode = #tpu.pipeline_mode<synchronous>, transform_indices = @transform_0, window_bounds = array<i64: 16, 128>}, {pipeline_mode = #tpu.pipeline_mode<synchronous>, transform_indices = @transform_1, window_bounds = array<i64: 128, 128>}, {pipeline_mode = #tpu.pipeline_mode<synchronous>, transform_indices = @transform_2, window_bounds = array<i64: 128, 128>}, {pipeline_mode = #tpu.pipeline_mode<synchronous>, transform_indices = @transform_3, window_bounds = array<i64: 128, 128>}, {pipeline_mode = #tpu.pipeline_mode<synchronous>, transform_indices = @transform_4, window_bounds = array<i64: 128, 128>}, {pipeline_mode = #tpu.pipeline_mode<synchronous>, transform_indices = @transform_5, window_bounds = array<i64: 1, 128>}, {pipeline_mode = #tpu.pipeline_mode<synchronous>, transform_indices = @transform_6, window_bounds = array<i64: 1, 128>}, {pipeline_mode = #tpu.pipeline_mode<synchronous>, transform_indices = @transform_7, window_bounds = array<i64: 1, 128>}, {pipeline_mode = #tpu.pipeline_mode<synchronous>, transform_indices = @transform_8, window_bounds = array<i64: 128, 256>}, {pipeline_mode = #tpu.pipeline_mode<synchronous>, transform_indices = @transform_9, window_bounds = array<i64: 1, 256>}, {pipeline_mode = #tpu.pipeline_mode<synchronous>, transform_indices = @transform_10, window_bounds = array<i64: 256, 128>}, {pipeline_mode = #tpu.pipeline_mode<synchronous>, transform_indices = @transform_11, window_bounds = array<i64: 1, 128>}, {pipeline_mode = #tpu.pipeline_mode<synchronous>, transform_indices = @transform_12, window_bounds = array<i64: 1, 128>}, {pipeline_mode = #tpu.pipeline_mode<synchronous>, transform_indices = @transform_13, window_bounds = array<i64: 1, 128>}, {pipeline_mode = #tpu.pipeline_mode<synchronous>, transform_indices = @transform_14, window_bounds = array<i64: 16, 128>}]} {
    %c0 = arith.constant 0 : index
    %c0_0 = arith.constant 0 : index
    %0 = vector.load %arg1[%c0, %c0_0] : memref<16x128xf32, #tpu.memory_space<vmem>>, vector<16x128xf32>
    %1 = arith.truncf %0 : vector<16x128xf32> to vector<16x128xbf16>
    %c0_1 = arith.constant 0 : index
    %c0_2 = arith.constant 0 : index
    %2 = vector.load %arg2[%c0_1, %c0_2] : memref<128x128xbf16, #tpu.memory_space<vmem>>, vector<128x128xbf16>
    %cst = arith.constant dense<0.000000e+00> : vector<16x128xf32>
    %3 = tpu.matmul %1, %2, %cst {dimension_numbers = #tpu.dot_dimension_numbers<[1], [0], [0], [1], [0, 0, 1, 1], [], []>} : vector<16x128xbf16>, vector<128x128xbf16>, vector<16x128xf32> -> vector<16x128xf32>
    %cst_3 = arith.constant 0.176776692 : f32
    %4 = vector.broadcast %cst_3 : f32 to vector<16x128xf32>
    %5 = arith.mulf %3, %4 : vector<16x128xf32>
    %c0_4 = arith.constant 0 : index
    %c0_5 = arith.constant 0 : index
    %6 = vector.load %arg3[%c0_4, %c0_5] : memref<128x128xbf16, #tpu.memory_space<vmem>>, vector<128x128xbf16>
    %cst_6 = arith.constant dense<0.000000e+00> : vector<16x128xf32>
    %7 = tpu.matmul %1, %6, %cst_6 {dimension_numbers = #tpu.dot_dimension_numbers<[1], [0], [0], [1], [0, 0, 1, 1], [], []>} : vector<16x128xbf16>, vector<128x128xbf16>, vector<16x128xf32> -> vector<16x128xf32>
    %c0_7 = arith.constant 0 : index
    %c0_8 = arith.constant 0 : index
    %8 = vector.load %arg4[%c0_7, %c0_8] : memref<128x128xbf16, #tpu.memory_space<vmem>>, vector<128x128xbf16>
    %cst_9 = arith.constant dense<0.000000e+00> : vector<16x128xf32>
    %9 = tpu.matmul %1, %8, %cst_9 {dimension_numbers = #tpu.dot_dimension_numbers<[1], [0], [0], [1], [0, 0, 1, 1], [], []>} : vector<16x128xbf16>, vector<128x128xbf16>, vector<16x128xf32> -> vector<16x128xf32>
    %10 = arith.truncf %5 : vector<16x128xf32> to vector<16x128xbf16>
    %11 = vector.shape_cast %10 : vector<16x128xbf16> to vector<2x8x128xbf16>
    %12 = arith.truncf %7 : vector<16x128xf32> to vector<16x128xbf16>
    %13 = vector.shape_cast %12 : vector<16x128xbf16> to vector<2x8x128xbf16>
    %14 = arith.truncf %9 : vector<16x128xf32> to vector<16x128xbf16>
    %15 = vector.shape_cast %14 : vector<16x128xbf16> to vector<2x8x128xbf16>
    %16 = vector.extract_strided_slice %11 {offsets = [0, 0, 0], sizes = [2, 8, 32], strides = [1, 1, 1]} : vector<2x8x128xbf16> to vector<2x8x32xbf16>
    %17 = vector.extract_strided_slice %11 {offsets = [0, 0, 32], sizes = [2, 8, 32], strides = [1, 1, 1]} : vector<2x8x128xbf16> to vector<2x8x32xbf16>
    %18 = vector.extract_strided_slice %11 {offsets = [0, 0, 64], sizes = [2, 8, 32], strides = [1, 1, 1]} : vector<2x8x128xbf16> to vector<2x8x32xbf16>
    %19 = vector.extract_strided_slice %11 {offsets = [0, 0, 96], sizes = [2, 8, 32], strides = [1, 1, 1]} : vector<2x8x128xbf16> to vector<2x8x32xbf16>
    %20 = tpu.concatenate %16, %17, %18, %19 in 0 : vector<2x8x32xbf16>, vector<2x8x32xbf16>, vector<2x8x32xbf16>, vector<2x8x32xbf16> -> vector<8x8x32xbf16>
    %21 = vector.extract_strided_slice %13 {offsets = [0, 0, 0], sizes = [2, 8, 32], strides = [1, 1, 1]} : vector<2x8x128xbf16> to vector<2x8x32xbf16>
    %22 = vector.extract_strided_slice %13 {offsets = [0, 0, 32], sizes = [2, 8, 32], strides = [1, 1, 1]} : vector<2x8x128xbf16> to vector<2x8x32xbf16>
    %23 = vector.extract_strided_slice %13 {offsets = [0, 0, 64], sizes = [2, 8, 32], strides = [1, 1, 1]} : vector<2x8x128xbf16> to vector<2x8x32xbf16>
    %24 = vector.extract_strided_slice %13 {offsets = [0, 0, 96], sizes = [2, 8, 32], strides = [1, 1, 1]} : vector<2x8x128xbf16> to vector<2x8x32xbf16>
    %25 = tpu.concatenate %21, %22, %23, %24 in 0 : vector<2x8x32xbf16>, vector<2x8x32xbf16>, vector<2x8x32xbf16>, vector<2x8x32xbf16> -> vector<8x8x32xbf16>
    %26 = vector.extract_strided_slice %15 {offsets = [0, 0, 0], sizes = [2, 8, 32], strides = [1, 1, 1]} : vector<2x8x128xbf16> to vector<2x8x32xbf16>
    %27 = vector.extract_strided_slice %15 {offsets = [0, 0, 32], sizes = [2, 8, 32], strides = [1, 1, 1]} : vector<2x8x128xbf16> to vector<2x8x32xbf16>
    %28 = vector.extract_strided_slice %15 {offsets = [0, 0, 64], sizes = [2, 8, 32], strides = [1, 1, 1]} : vector<2x8x128xbf16> to vector<2x8x32xbf16>
    %29 = vector.extract_strided_slice %15 {offsets = [0, 0, 96], sizes = [2, 8, 32], strides = [1, 1, 1]} : vector<2x8x128xbf16> to vector<2x8x32xbf16>
    %30 = tpu.concatenate %26, %27, %28, %29 in 0 : vector<2x8x32xbf16>, vector<2x8x32xbf16>, vector<2x8x32xbf16>, vector<2x8x32xbf16> -> vector<8x8x32xbf16>
    "tpu.trace_start"() <{level = 10 : i32, message = "gnk,gmk->gnm"}> : () -> ()
    %cst_10 = arith.constant dense<0.000000e+00> : vector<8x8x8xf32>
    %31 = tpu.matmul %20, %25, %cst_10 {dimension_numbers = #tpu.dot_dimension_numbers<[2], [2], [1], [1], [0, 0, 0, 1, 1, 1], [0], [0]>} : vector<8x8x32xbf16>, vector<8x8x32xbf16>, vector<8x8x8xf32> -> vector<8x8x8xf32>
    "tpu.trace_stop"() : () -> ()
    %cst_11 = arith.constant dense<0xFF800000> : vector<8x8xf32>
    %32 = vector.multi_reduction <maximumf>, %31, %cst_11 [2] : vector<8x8x8xf32> to vector<8x8xf32>
    %33 = vector.shape_cast %32 : vector<8x8xf32> to vector<8x8x1xf32>
    %34 = vector.broadcast %33 : vector<8x8x1xf32> to vector<8x8x8xf32>
    %35 = arith.subf %31, %34 : vector<8x8x8xf32>
    %36 = math.exp %35 : vector<8x8x8xf32>
    %cst_12 = arith.constant dense<0.000000e+00> : vector<8x8xf32>
    %37 = vector.multi_reduction <add>, %36, %cst_12 [2] : vector<8x8x8xf32> to vector<8x8xf32>
    %38 = vector.shape_cast %37 : vector<8x8xf32> to vector<8x8x1xf32>
    %39 = vector.broadcast %38 : vector<8x8x1xf32> to vector<8x8x8xf32>
    %40 = arith.divf %36, %39 : vector<8x8x8xf32>
    %41 = arith.truncf %40 : vector<8x8x8xf32> to vector<8x8x8xbf16>
    "tpu.trace_start"() <{level = 10 : i32, message = "gnm,gmk->gnk"}> : () -> ()
    %cst_13 = arith.constant dense<0.000000e+00> : vector<8x8x32xf32>
    %42 = tpu.matmul %41, %30, %cst_13 {dimension_numbers = #tpu.dot_dimension_numbers<[2], [1], [1], [2], [0, 0, 0, 1, 1, 2], [0], [0]>} : vector<8x8x8xbf16>, vector<8x8x32xbf16>, vector<8x8x32xf32> -> vector<8x8x32xf32>
    "tpu.trace_stop"() : () -> ()
    %43 = vector.extract_strided_slice %42 {offsets = [0, 0, 0], sizes = [2, 8, 32], strides = [1, 1, 1]} : vector<8x8x32xf32> to vector<2x8x32xf32>
    %44 = vector.shape_cast %43 : vector<2x8x32xf32> to vector<16x32xf32>
    %45 = vector.extract_strided_slice %42 {offsets = [2, 0, 0], sizes = [2, 8, 32], strides = [1, 1, 1]} : vector<8x8x32xf32> to vector<2x8x32xf32>
    %46 = vector.shape_cast %45 : vector<2x8x32xf32> to vector<16x32xf32>
    %47 = vector.extract_strided_slice %42 {offsets = [4, 0, 0], sizes = [2, 8, 32], strides = [1, 1, 1]} : vector<8x8x32xf32> to vector<2x8x32xf32>
    %48 = vector.shape_cast %47 : vector<2x8x32xf32> to vector<16x32xf32>
    %49 = vector.extract_strided_slice %42 {offsets = [6, 0, 0], sizes = [2, 8, 32], strides = [1, 1, 1]} : vector<8x8x32xf32> to vector<2x8x32xf32>
    %50 = vector.shape_cast %49 : vector<2x8x32xf32> to vector<16x32xf32>
    %51 = tpu.concatenate %44, %46, %48, %50 in 1 : vector<16x32xf32>, vector<16x32xf32>, vector<16x32xf32>, vector<16x32xf32> -> vector<16x128xf32>
    %52 = arith.truncf %51 : vector<16x128xf32> to vector<16x128xbf16>
    %c0_14 = arith.constant 0 : index
    %c0_15 = arith.constant 0 : index
    %53 = vector.load %arg5[%c0_14, %c0_15] : memref<128x128xbf16, #tpu.memory_space<vmem>>, vector<128x128xbf16>
    %cst_16 = arith.constant dense<0.000000e+00> : vector<16x128xf32>
    %54 = tpu.matmul %52, %53, %cst_16 {dimension_numbers = #tpu.dot_dimension_numbers<[1], [0], [0], [1], [0, 0, 1, 1], [], []>} : vector<16x128xbf16>, vector<128x128xbf16>, vector<16x128xf32> -> vector<16x128xf32>
    %c0_17 = arith.constant 0 : index
    %c0_18 = arith.constant 0 : index
    %55 = vector.load %arg6[%c0_17, %c0_18] : memref<1x128xf32, #tpu.memory_space<vmem>>, vector<1x128xf32>
    %56 = vector.broadcast %55 : vector<1x128xf32> to vector<16x128xf32>
    %57 = arith.addf %54, %56 : vector<16x128xf32>
    %c0_19 = arith.constant 0 : index
    %c0_20 = arith.constant 0 : index
    %58 = vector.load %arg7[%c0_19, %c0_20] : memref<1x128xf32, #tpu.memory_space<vmem>>, vector<1x128xf32>
    %c0_21 = arith.constant 0 : index
    %c0_22 = arith.constant 0 : index
    %59 = vector.load %arg8[%c0_21, %c0_22] : memref<1x128xf32, #tpu.memory_space<vmem>>, vector<1x128xf32>
    %60 = arith.addf %0, %57 : vector<16x128xf32>
    %cst_23 = arith.constant dense<0.000000e+00> : vector<128xf32>
    %61 = vector.multi_reduction <add>, %60, %cst_23 [0] : vector<16x128xf32> to vector<128xf32>
    %62 = vector.shape_cast %61 : vector<128xf32> to vector<1x128xf32>
    %cst_24 = arith.constant 6.250000e-02 : f32
    %63 = vector.broadcast %cst_24 : f32 to vector<1x128xf32>
    %64 = arith.mulf %62, %63 : vector<1x128xf32>
    %65 = vector.broadcast %64 : vector<1x128xf32> to vector<16x128xf32>
    %66 = arith.subf %60, %65 : vector<16x128xf32>
    %67 = arith.mulf %66, %66 : vector<16x128xf32>
    %cst_25 = arith.constant dense<0.000000e+00> : vector<128xf32>
    %68 = vector.multi_reduction <add>, %67, %cst_25 [0] : vector<16x128xf32> to vector<128xf32>
    %69 = vector.shape_cast %68 : vector<128xf32> to vector<1x128xf32>
    %cst_26 = arith.constant 6.250000e-02 : f32
    %70 = vector.broadcast %cst_26 : f32 to vector<1x128xf32>
    %71 = arith.mulf %69, %70 : vector<1x128xf32>
    %cst_27 = arith.constant 9.99999974E-6 : f32
    %72 = vector.broadcast %cst_27 : f32 to vector<1x128xf32>
    %73 = arith.addf %71, %72 : vector<1x128xf32>
    %74 = math.rsqrt %73 : vector<1x128xf32>
    %75 = vector.broadcast %74 : vector<1x128xf32> to vector<16x128xf32>
    %76 = arith.mulf %66, %75 : vector<16x128xf32>
    %77 = vector.broadcast %58 : vector<1x128xf32> to vector<16x128xf32>
    %78 = arith.mulf %76, %77 : vector<16x128xf32>
    %79 = vector.broadcast %59 : vector<1x128xf32> to vector<16x128xf32>
    %80 = arith.addf %78, %79 : vector<16x128xf32>
    %81 = arith.truncf %80 : vector<16x128xf32> to vector<16x128xbf16>
    %c0_28 = arith.constant 0 : index
    %c0_29 = arith.constant 0 : index
    %82 = vector.load %arg9[%c0_28, %c0_29] : memref<128x256xbf16, #tpu.memory_space<vmem>>, vector<128x256xbf16>
    %cst_30 = arith.constant dense<0.000000e+00> : vector<16x256xf32>
    %83 = tpu.matmul %81, %82, %cst_30 {dimension_numbers = #tpu.dot_dimension_numbers<[1], [0], [0], [1], [0, 0, 1, 1], [], []>} : vector<16x128xbf16>, vector<128x256xbf16>, vector<16x256xf32> -> vector<16x256xf32>
    %c0_31 = arith.constant 0 : index
    %c0_32 = arith.constant 0 : index
    %84 = vector.load %arg10[%c0_31, %c0_32] : memref<1x256xf32, #tpu.memory_space<vmem>>, vector<1x256xf32>
    %85 = vector.broadcast %84 : vector<1x256xf32> to vector<16x256xf32>
    %86 = arith.addf %83, %85 : vector<16x256xf32>
    %cst_33 = arith.constant 0.000000e+00 : f32
    %87 = vector.broadcast %cst_33 : f32 to vector<16x256xf32>
    %88 = arith.maximumf %86, %87 : vector<16x256xf32>
    %89 = arith.truncf %88 : vector<16x256xf32> to vector<16x256xbf16>
    %c0_34 = arith.constant 0 : index
    %c0_35 = arith.constant 0 : index
    %90 = vector.load %arg11[%c0_34, %c0_35] : memref<256x128xbf16, #tpu.memory_space<vmem>>, vector<256x128xbf16>
    %cst_36 = arith.constant dense<0.000000e+00> : vector<16x128xf32>
    %91 = tpu.matmul %89, %90, %cst_36 {dimension_numbers = #tpu.dot_dimension_numbers<[1], [0], [0], [1], [0, 0, 1, 1], [], []>} : vector<16x256xbf16>, vector<256x128xbf16>, vector<16x128xf32> -> vector<16x128xf32>
    %c0_37 = arith.constant 0 : index
    %c0_38 = arith.constant 0 : index
    %92 = vector.load %arg12[%c0_37, %c0_38] : memref<1x128xf32, #tpu.memory_space<vmem>>, vector<1x128xf32>
    %93 = vector.broadcast %92 : vector<1x128xf32> to vector<16x128xf32>
    %94 = arith.addf %91, %93 : vector<16x128xf32>
    %c0_39 = arith.constant 0 : index
    %c0_40 = arith.constant 0 : index
    %95 = vector.load %arg13[%c0_39, %c0_40] : memref<1x128xf32, #tpu.memory_space<vmem>>, vector<1x128xf32>
    %c0_41 = arith.constant 0 : index
    %c0_42 = arith.constant 0 : index
    %96 = vector.load %arg14[%c0_41, %c0_42] : memref<1x128xf32, #tpu.memory_space<vmem>>, vector<1x128xf32>
    %97 = arith.addf %80, %94 : vector<16x128xf32>
    %cst_43 = arith.constant dense<0.000000e+00> : vector<128xf32>
    %98 = vector.multi_reduction <add>, %97, %cst_43 [0] : vector<16x128xf32> to vector<128xf32>
    %99 = vector.shape_cast %98 : vector<128xf32> to vector<1x128xf32>
    %cst_44 = arith.constant 6.250000e-02 : f32
    %100 = vector.broadcast %cst_44 : f32 to vector<1x128xf32>
    %101 = arith.mulf %99, %100 : vector<1x128xf32>
    %102 = vector.broadcast %101 : vector<1x128xf32> to vector<16x128xf32>
    %103 = arith.subf %97, %102 : vector<16x128xf32>
    %104 = arith.mulf %103, %103 : vector<16x128xf32>
    %cst_45 = arith.constant dense<0.000000e+00> : vector<128xf32>
    %105 = vector.multi_reduction <add>, %104, %cst_45 [0] : vector<16x128xf32> to vector<128xf32>
    %106 = vector.shape_cast %105 : vector<128xf32> to vector<1x128xf32>
    %cst_46 = arith.constant 6.250000e-02 : f32
    %107 = vector.broadcast %cst_46 : f32 to vector<1x128xf32>
    %108 = arith.mulf %106, %107 : vector<1x128xf32>
    %cst_47 = arith.constant 9.99999974E-6 : f32
    %109 = vector.broadcast %cst_47 : f32 to vector<1x128xf32>
    %110 = arith.addf %108, %109 : vector<1x128xf32>
    %111 = math.rsqrt %110 : vector<1x128xf32>
    %112 = vector.broadcast %111 : vector<1x128xf32> to vector<16x128xf32>
    %113 = arith.mulf %103, %112 : vector<16x128xf32>
    %114 = vector.broadcast %95 : vector<1x128xf32> to vector<16x128xf32>
    %115 = arith.mulf %113, %114 : vector<16x128xf32>
    %116 = vector.broadcast %96 : vector<1x128xf32> to vector<16x128xf32>
    %117 = arith.addf %115, %116 : vector<16x128xf32>
    %c0_48 = arith.constant 0 : index
    %c0_49 = arith.constant 0 : index
    %118 = vector.load %arg15[%c0_48, %c0_49] : memref<16x128xf32, #tpu.memory_space<vmem>>, vector<16x128xf32>
    tpu.vector_store %arg15[%c0_48, %c0_49], %117 {strides = array<i32>} : memref<16x128xf32, #tpu.memory_space<vmem>>, vector<16x128xf32>,
    return
  }
  func.func @transform_0(%arg0: i32) -> (i32, i32) {
    %c0_i32 = arith.constant 0 : i32
    %c0_i32_0 = arith.constant 0 : i32
    %c0_i32_1 = arith.constant 0 : i32
    return %c0_i32, %c0_i32_0 : i32, i32
  }
  func.func @transform_1(%arg0: i32) -> (i32, i32) {
    %c0_i32 = arith.constant 0 : i32
    %c0_i32_0 = arith.constant 0 : i32
    %c0_i32_1 = arith.constant 0 : i32
    return %c0_i32, %c0_i32_0 : i32, i32
  }
  func.func @transform_2(%arg0: i32) -> (i32, i32) {
    %c0_i32 = arith.constant 0 : i32
    %c0_i32_0 = arith.constant 0 : i32
    %c0_i32_1 = arith.constant 0 : i32
    return %c0_i32, %c0_i32_0 : i32, i32
  }
  func.func @transform_3(%arg0: i32) -> (i32, i32) {
    %c0_i32 = arith.constant 0 : i32
    %c0_i32_0 = arith.constant 0 : i32
    %c0_i32_1 = arith.constant 0 : i32
    return %c0_i32, %c0_i32_0 : i32, i32
  }
  func.func @transform_4(%arg0: i32) -> (i32, i32) {
    %c0_i32 = arith.constant 0 : i32
    %c0_i32_0 = arith.constant 0 : i32
    %c0_i32_1 = arith.constant 0 : i32
    return %c0_i32, %c0_i32_0 : i32, i32
  }
  func.func @transform_5(%arg0: i32) -> (i32, i32) {
    %c0_i32 = arith.constant 0 : i32
    %c0_i32_0 = arith.constant 0 : i32
    %c0_i32_1 = arith.constant 0 : i32
    return %c0_i32, %c0_i32_0 : i32, i32
  }
  func.func @transform_6(%arg0: i32) -> (i32, i32) {
    %c0_i32 = arith.constant 0 : i32
    %c0_i32_0 = arith.constant 0 : i32
    %c0_i32_1 = arith.constant 0 : i32
    return %c0_i32, %c0_i32_0 : i32, i32
  }
  func.func @transform_7(%arg0: i32) -> (i32, i32) {
    %c0_i32 = arith.constant 0 : i32
    %c0_i32_0 = arith.constant 0 : i32
    %c0_i32_1 = arith.constant 0 : i32
    return %c0_i32, %c0_i32_0 : i32, i32
  }
  func.func @transform_8(%arg0: i32) -> (i32, i32) {
    %c0_i32 = arith.constant 0 : i32
    %c0_i32_0 = arith.constant 0 : i32
    %c0_i32_1 = arith.constant 0 : i32
    return %c0_i32, %c0_i32_0 : i32, i32
  }
  func.func @transform_9(%arg0: i32) -> (i32, i32) {
    %c0_i32 = arith.constant 0 : i32
    %c0_i32_0 = arith.constant 0 : i32
    %c0_i32_1 = arith.constant 0 : i32
    return %c0_i32, %c0_i32_0 : i32, i32
  }
  func.func @transform_10(%arg0: i32) -> (i32, i32) {
    %c0_i32 = arith.constant 0 : i32
    %c0_i32_0 = arith.constant 0 : i32
    %c0_i32_1 = arith.constant 0 : i32
    return %c0_i32, %c0_i32_0 : i32, i32
  }
  func.func @transform_11(%arg0: i32) -> (i32, i32) {
    %c0_i32 = arith.constant 0 : i32
    %c0_i32_0 = arith.constant 0 : i32
    %c0_i32_1 = arith.constant 0 : i32
    return %c0_i32, %c0_i32_0 : i32, i32
  }
  func.func @transform_12(%arg0: i32) -> (i32, i32) {
    %c0_i32 = arith.constant 0 : i32
    %c0_i32_0 = arith.constant 0 : i32
    %c0_i32_1 = arith.constant 0 : i32
    return %c0_i32, %c0_i32_0 : i32, i32
  }
  func.func @transform_13(%arg0: i32) -> (i32, i32) {
    %c0_i32 = arith.constant 0 : i32
    %c0_i32_0 = arith.constant 0 : i32
    %c0_i32_1 = arith.constant 0 : i32
    return %c0_i32, %c0_i32_0 : i32, i32
  }
  func.func @transform_14(%arg0: i32) -> (i32, i32) {
    %c0_i32 = arith.constant 0 : i32
    %c0_i32_0 = arith.constant 0 : i32
    %c0_i32_1 = arith.constant 0 : i32
    return %c0_i32, %c0_i32_0 : i32, i32
  }
}

</mosaic_0001>

<bundles_post_ra>
// kernel: encoder_layer_forward.1
= control target key start
LH: loop header
LB: loop body
LE: loop exit
PB: predicated region body
PF: predicated region fallthrough
CT: control target
= control target key end

     0   :  { %19 = vsyncpa [#allocation3], 0  ;;  %s3026_s0 = inlined_call_operand.hbm [shape: f32[16,128], index: 0, kind: input, shape index: {}]   ;;  %s3027_s1 = inlined_call_operand.hbm [shape: bf16[128,128], index: 1, kind: input, shape index: {}]   ;;  %s3028_s2 = inlined_call_operand.hbm [shape: bf16[128,128], index: 2, kind: input, shape index: {}]   ;;  %s3029_s3 = inlined_call_operand.hbm [shape: bf16[128,128], index: 3, kind: input, shape index: {}]   ;;  %s3030_s4 = inlined_call_operand.hbm [shape: bf16[128,128], index: 4, kind: input, shape index: {}]   ;;  %s3031_s5 = inlined_call_operand.vmem [shape: f32[1,128], index: 5, kind: input, shape index: {}]   ;;  %s3032_s6 = inlined_call_operand.vmem [shape: f32[1,128], index: 6, kind: input, shape index: {}]   ;;  %s3033_s7 = inlined_call_operand.vmem [shape: f32[1,128], index: 7, kind: input, shape index: {}]   ;;  %s3034_s8 = inlined_call_operand.hbm [shape: bf16[128,256], index: 8, kind: input, shape index: {}]   ;;  %s3035_s9 = inlined_call_operand.vmem [shape: f32[1,256], index: 9, kind: input, shape index: {}]   ;;  %s3036_s10 = inlined_call_operand.hbm [shape: bf16[256,128], index: 10, kind: input, shape index: {}]   ;;  %s3037_s11 = inlined_call_operand.hbm [shape: f32[1,128], index: 11, kind: input, shape index: {}]   ;;  %s3038_s12 = inlined_call_operand.vmem [shape: f32[1,128], index: 12, kind: input, shape index: {}]   ;;  %s3039_s13 = inlined_call_operand.vmem [shape: f32[1,128], index: 13, kind: input, shape index: {}]   ;;  %s3040_s14 = inlined_call_operand.hbm [shape: f32[16,128], index: 14, kind: output, shape index: {}]  }
   0x1   :  { %20 = vsyncpa [#allocation6], 0 }
   0x2   :  { %21 = vsyncpa [#allocation9], 0 }
   0x3   :  { %22 = vsyncpa [#allocation12], 0 }
   0x4   :  { %23 = vsyncpa [#allocation15], 0 }
   0x5   :  { %24 = vsyncpa [#allocation4], 0  ;;  %s2654_s29 = smov [#allocation5]  }
   0x6   :  { %s42_s30 = sshll.u32 %s2654_s29, 4  ;;  %s43_s30 = int_to_ptr.vmem [resolvable:$true] %s42_s30 }
   0x7   :  { %s2470_s15 = scalar_lea.vmem %s43_s30, 1024  ;;  %p2475_p1 = scmp.lt.s32.totalorder %s43_s30, %s43_s30 }
   0x8   :  { %p2471_p0 = scmp.ne.s32.totalorder %s43_s30, %s2470_s15  ;;  %p2476_p2 = scmp.lt.s32.totalorder %s2470_s15, %s2470_s15 }
   0xa   :  { %p2477_p3 = por %p2476_p2, %p2475_p1 }
   0xc   :  { %p2478_p4 = pnand %p2477_p3, %p2471_p0 }
   0xe   :  { %2481 = shalt.err (!%p2478_p4)
}
   0xf   :  { %s2655_s16 = smov 64   ;;  %s2656_s17 = smov 4  }
  0x10   :  { %48 = dma.hbm_to_vmem [thread:$0]  %s3027_s1, 1024, %s43_s30, [#allocation6], %s2655_s16, %s2655_s16, %s2656_s17  }
  0x11   :  { %s2657_s20 = smov [#allocation8]  }
  0x12   :  { %s66_s21 = sshll.u32 %s2657_s20, 4  ;;  %s67_s21 = int_to_ptr.vmem [resolvable:$true] %s66_s21 }
  0x13   :  { %s2490_s22 = scalar_lea.vmem %s67_s21, 1024  ;;  %p2495_p6 = scmp.lt.s32.totalorder %s67_s21, %s67_s21 }
  0x14   :  { %p2491_p5 = scmp.ne.s32.totalorder %s67_s21, %s2490_s22  ;;  %p2496_p7 = scmp.lt.s32.totalorder %s2490_s22, %s2490_s22 }
  0x16   :  { %p2497_p8 = por %p2496_p7, %p2495_p6 }
  0x18   :  { %p2498_p9 = pnand %p2497_p8, %p2491_p5 }
  0x1a   :  { %2501 = shalt.err (!%p2498_p9)
}
  0x1b   :  { %72 = dma.hbm_to_vmem [thread:$0]  %s3029_s3, 1024, %s67_s21, [#allocation9], %s2655_s16, %s2655_s16, %s2656_s17  }
  0x1c   :  { %s2658_s25 = smov [#allocation11]   ;;  %s2659_s1 = smov [#allocation2]  }
  0x1d   :  { %s96_s26 = sshll.u32 %s2658_s25, 4  ;;  %s30_s27 = sshll.u32 %s2659_s1, 4  ;;  %s97_s26 = int_to_ptr.vmem [resolvable:$true] %s96_s26  ;;  %s31_s27 = int_to_ptr.vmem [resolvable:$true] %s30_s27 }
  0x1e   :  { %s2510_s28 = scalar_lea.vmem %s97_s26, 2048  ;;  %p2515_p11 = scmp.lt.s32.totalorder %s97_s26, %s97_s26 }
  0x1f   :  { %p2511_p10 = scmp.ne.s32.totalorder %s97_s26, %s2510_s28  ;;  %p2516_p12 = scmp.lt.s32.totalorder %s2510_s28, %s2510_s28 }
  0x21   :  { %p2517_p13 = por %p2516_p12, %p2515_p11 }
  0x23   :  { %p2518_p0 = pnand %p2517_p13, %p2511_p10 }
  0x25   :  { %2521 = shalt.err (!%p2518_p0)
}
  0x26   :  { %s2660_s29 = smov 128   ;;  %s2661_s30 = smov 8  }
  0x27   :  { %102 = dma.hbm_to_vmem [thread:$0]  %s3034_s8, 2048, %s97_s26, [#allocation12], %s2660_s29, %s2660_s29, %s2661_s30  }
  0x28   :  { %s2530_s18 = scalar_lea.vmem %s31_s27, 256  ;;  %p2535_p2 = scmp.lt.s32.totalorder %s31_s27, %s31_s27 }
  0x29   :  { %p2531_p1 = scmp.ne.s32.totalorder %s31_s27, %s2530_s18  ;;  %p2536_p3 = scmp.lt.s32.totalorder %s2530_s18, %s2530_s18 }
  0x2b   :  { %p2537_p4 = por %p2536_p3, %p2535_p2 }
  0x2d   :  { %p2538_p5 = pnand %p2537_p4, %p2531_p1 }
  0x2f   :  { %2541 = shalt.err (!%p2538_p5)
}
  0x30   :  { %36 = dma.hbm_to_vmem [thread:$0]  %s3026_s0, 256, %s31_s27, [#allocation3], %s2660_s29, %s2660_s29, %s2661_s30  }
  0x31   :  { %s2662_s21 = smov [#allocation7]   ;;  %s2663_s23 = smov [#allocation10]  }
  0x32   :  { %s54_s22 = sshll.u32 %s2662_s21, 4  ;;  %s78_s24 = sshll.u32 %s2663_s23, 4  ;;  %s55_s22 = int_to_ptr.vmem [resolvable:$true] %s54_s22  ;;  %s79_s24 = int_to_ptr.vmem [resolvable:$true] %s78_s24 }
  0x33   :  { %s2550_s8 = scalar_lea.vmem %s55_s22, 1024  ;;  %p2555_p7 = scmp.lt.s32.totalorder %s55_s22, %s55_s22 }
  0x34   :  { %p2551_p6 = scmp.ne.s32.totalorder %s55_s22, %s2550_s8  ;;  %p2556_p8 = scmp.lt.s32.totalorder %s2550_s8, %s2550_s8 }
  0x36   :  { %p2557_p9 = por %p2556_p8, %p2555_p7 }
  0x38   :  { %p2558_p10 = pnand %p2557_p9, %p2551_p6 }
  0x3a   :  { %2561 = shalt.err (!%p2558_p10)
}
  0x3b   :  { %60 = dma.hbm_to_vmem [thread:$0]  %s3028_s2, 1024, %s55_s22, [#allocation6], %s2655_s16, %s2655_s16, %s2656_s17  }
  0x3c   :  { %s2570_s0 = scalar_lea.vmem %s79_s24, 1024  ;;  %p2575_p12 = scmp.lt.s32.totalorder %s79_s24, %s79_s24 }
  0x3d   :  { %p2571_p11 = scmp.ne.s32.totalorder %s79_s24, %s2570_s0  ;;  %p2576_p13 = scmp.lt.s32.totalorder %s2570_s0, %s2570_s0 }
  0x3f   :  { %p2577_p0 = por %p2576_p13, %p2575_p12 }
  0x41   :  { %p2578_p1 = pnand %p2577_p0, %p2571_p11 }
  0x43   :  { %2581 = shalt.err (!%p2578_p1)
}
  0x44   :  { %84 = dma.hbm_to_vmem [thread:$0]  %s3030_s4, 1024, %s79_s24, [#allocation9], %s2655_s16, %s2655_s16, %s2656_s17  }
  0x45   :  { %s2664_s28 = smov [#allocation13]   ;;  %s2665_s3 = smov [#allocation14]  }
  0x46   :  { %s110_s15 = sshll.u32 %s2664_s28, 4  ;;  %s123_s18 = sshll.u32 %s2665_s3, 4  ;;  %s111_s15 = int_to_ptr.vmem [resolvable:$true] %s110_s15  ;;  %s124_s18 = int_to_ptr.vmem [resolvable:$true] %s123_s18 }
  0x47   :  { %s2590_s2 = scalar_lea.vmem %s111_s15, 2048  ;;  %p2595_p3 = scmp.lt.s32.totalorder %s111_s15, %s111_s15 }
  0x48   :  { %p2591_p2 = scmp.ne.s32.totalorder %s111_s15, %s2590_s2  ;;  %p2596_p4 = scmp.lt.s32.totalorder %s2590_s2, %s2590_s2 }
  0x4a   :  { %p2597_p5 = por %p2596_p4, %p2595_p3 }
  0x4c   :  { %p2598_p6 = pnand %p2597_p5, %p2591_p2 }
  0x4e   :  { %2601 = shalt.err (!%p2598_p6)
}
  0x4f   :  { %116 = dma.hbm_to_vmem [thread:$0]  %s3036_s10, 2048, %s111_s15, [#allocation12], %s2655_s16, %s2655_s16, %s2656_s17  }
  0x50   :  { %s2610_s4 = scalar_lea.vmem %s124_s18, 16  ;;  %s2614_s21 = scalar_lea.vmem %s124_s18, 32 }
  0x51   :  { %p2611_p7 = scmp.ne.s32.totalorder %s124_s18, %s2610_s4  ;;  %p2615_p8 = scmp.lt.s32.totalorder %s124_s18, %s124_s18 }
  0x52   :  { %p2616_p9 = scmp.lt.s32.totalorder %s2614_s21, %s2610_s4 }
  0x54   :  { %p2617_p10 = por %p2616_p9, %p2615_p8 }
  0x56   :  { %p2618_p11 = pnand %p2617_p10, %p2611_p7 }
  0x58   :  { %2621 = shalt.err (!%p2618_p11)
}
  0x59   :  { %126 = dma.hbm_to_vmem [thread:$0]  %s3037_s11, 16, %s124_s18, [#allocation15]  }
  0x5a   :  { %2642 = dma.done.wait [#allocation3], 256  }
  0x5b   :  { %2643 = vsyncadd [#allocation3], 4294967040 }
  0x5c   :  { %2644 = dma.done.wait [#allocation6], 2048  }
  0x5d   :  { %2645 = vsyncadd [#allocation6], 4294965248 }
  0x5e   :  { %2646 = dma.done.wait [#allocation9], 2048  }
  0x5f   :  { %2647 = vsyncadd [#allocation9], 4294965248 }
  0x60   :  { %2648 = dma.done.wait [#allocation12], 4096  }
  0x61   :  { %2649 = vsyncadd [#allocation12], 4294963200 }
  0x62   :  { %2650 = dma.done.wait [#allocation15], 16  }
  0x63   :  { %2651 = vsyncadd [#allocation15], 4294967280  ;;  %v2666_v0 = vmov 0.0   ;;  %vm2667_vm0 = vmmov 0   ;;  %v2352_v1 = vld [vmem:[#allocation7 + $0x38] sm:$0xff]   ;;  %v2354_v3 = vld [vmem:[#allocation7 + $0x30] sm:$0xff]  }
  0x64   :  { %2163 = vmatprep.subr.bf16.mxu1 %v2666_v0  ;;  %2143 = vmatprep.subr.bf16.mxu0 %v2666_v0  ;;  %v2353_v2 = vld [vmem:[#allocation5 + $0x38] sm:$0xff]   ;;  %v2355_v4 = vld [vmem:[#allocation5 + $0x30] sm:$0xff]   ;;  %v2356_v5 = vld [vmem:[#allocation7 + $0x28] sm:$0xff]   ;;  %vm530_vm1 = vcmask 261120   ;;  %s2668_s10 = smov 96   ;;  %s2669_s11 = smov 32  }
  0x65   :  { %2179 = vmatprep.mubr.msk.bf16.mxu1 %vm2667_vm0, %v2666_v0  ;;  %2159 = vmatprep.mubr.msk.bf16.mxu0 %vm2667_vm0, %v2666_v0  ;;  %v2357_v6 = vld [vmem:[#allocation5 + $0x28] sm:$0xff]   ;;  %v2358_v7 = vld [vmem:[#allocation7 + $0x20] sm:$0xff]   ;;  %v2360_v9 = vld [vmem:[#allocation7 + $0x18] sm:$0xff]   ;;  %vm899_vm2 = vcmask 64512   ;;  %vm999_vm3 = vcmask 1043456   ;;  %vm1391_vm4 = vcmask 523264  }
  0x66   :  { %2164 = vmatpush3.bf16.msra.mxu1 %v2352_v1  ;;  %2144 = vmatpush3.bf16.msra.mxu0 %v2353_v2  ;;  %v2359_v8 = vld [vmem:[#allocation5 + $0x20] sm:$0xff]   ;;  %v2361_v10 = vld [vmem:[#allocation5 + $0x18] sm:$0xff]   ;;  %v2362_v11 = vld [vmem:[#allocation7 + $0x10] sm:$0xff]   ;;  %vm1394_vm5 = vcmask 785408   ;;  %s2671_s27 = smov [#allocation16]  }
  0x67   :  { %2165 = vmatprep.subr.bf16.mxu1 %v2666_v0  ;;  %2145 = vmatprep.subr.bf16.mxu0 %v2666_v0  ;;  %v2363_v12 = vld [vmem:[#allocation5 + $0x10] sm:$0xff]   ;;  %v2364_v13 = vld [vmem:[#allocation7 + $0x8] sm:$0xff]   ;;  %v2366_v15 = vld [vmem:[#allocation7] sm:$0xff]   ;;  %s1939_s28 = sshll.u32 %s2671_s27, 4  ;;  %s1940_s28 = int_to_ptr.vmem [resolvable:$true] %s1939_s28 }
  0x68   :  { %v2365_v14 = vld [vmem:[#allocation5 + $0x8] sm:$0xff]   ;;  %v156_v16 = vld [vmem:[#allocation2] sm:$0xff]  ;;  %v157_v17 = vld [vmem:[#allocation2 + $0x8] sm:$0xff]  ;;  %s2622_s15 = scalar_lea.vmem %s1940_s28, 256  ;;  %p2627_p13 = scmp.lt.s32.totalorder %s1940_s28, %s1940_s28 }
  0x69   :  { %v2367_v18 = vld [vmem:[#allocation5] sm:$0xff]   ;;  %v2812_v19 = vpack.c.bf16 %v157_v17, %v156_v16  ;;  %v2368_v36 = vld [vmem:[#allocation8 + $0x38] sm:$0xff]   ;;  %v2369_v37 = vld [vmem:[#allocation8 + $0x30] sm:$0xff]   ;;  %p2623_p12 = scmp.ne.s32.totalorder %s1940_s28, %s2622_s15  ;;  %p2628_p0 = scmp.lt.s32.totalorder %s2622_s15, %s2622_s15 }
  0x6a   :  { %2166 = vmatpush3.bf16.msra.mxu1 %v2354_v3  ;;  %2146 = vmatpush3.bf16.msra.mxu0 %v2355_v4  ;;  %v2370_v38 = vld [vmem:[#allocation8 + $0x28] sm:$0xff]   ;;  %v2371_v39 = vld [vmem:[#allocation8 + $0x20] sm:$0xff]   ;;  %v2372_v40 = vld [vmem:[#allocation8 + $0x18] sm:$0xff]  }
  0x6b   :  { %2167 = vmatprep.subr.bf16.mxu1 %v2666_v0  ;;  %2147 = vmatprep.subr.bf16.mxu0 %v2666_v0  ;;  %v2373_v41 = vld [vmem:[#allocation8 + $0x10] sm:$0xff]   ;;  %v2374_v42 = vld [vmem:[#allocation8 + $0x8] sm:$0xff]   ;;  %v2375_v43 = vld [vmem:[#allocation8] sm:$0xff]   ;;  %p2629_p1 = por %p2628_p0, %p2627_p13 }
  0x6d   :  { %p2630_p2 = pnand %p2629_p1, %p2623_p12 }
  0x6e   :  { %2168 = vmatpush3.bf16.msra.mxu1 %v2356_v5  ;;  %2148 = vmatpush3.bf16.msra.mxu0 %v2357_v6 }
  0x6f   :  { %2169 = vmatprep.subr.bf16.mxu1 %v2666_v0  ;;  %2149 = vmatprep.subr.bf16.mxu0 %v2666_v0 }
  0x72   :  { %2170 = vmatpush3.bf16.msra.mxu1 %v2358_v7  ;;  %2150 = vmatpush3.bf16.msra.mxu0 %v2359_v8 }
  0x73   :  { %2171 = vmatprep.subr.bf16.mxu1 %v2666_v0  ;;  %2151 = vmatprep.subr.bf16.mxu0 %v2666_v0 }
  0x76   :  { %2172 = vmatpush3.bf16.msra.mxu1 %v2360_v9  ;;  %2152 = vmatpush3.bf16.msra.mxu0 %v2361_v10 }
  0x77   :  { %2173 = vmatprep.subr.bf16.mxu1 %v2666_v0  ;;  %2153 = vmatprep.subr.bf16.mxu0 %v2666_v0 }
  0x7a   :  { %2174 = vmatpush3.bf16.msra.mxu1 %v2362_v11  ;;  %2154 = vmatpush3.bf16.msra.mxu0 %v2363_v12 }
  0x7b   :  { %2175 = vmatprep.subr.bf16.mxu1 %v2666_v0  ;;  %2155 = vmatprep.subr.bf16.mxu0 %v2666_v0 }
  0x7e   :  { %2176 = vmatpush3.bf16.msra.mxu1 %v2364_v13  ;;  %2156 = vmatpush3.bf16.msra.mxu0 %v2365_v14 }
  0x7f   :  { %2177 = vmatprep.subr.bf16.mxu1 %v2666_v0  ;;  %2157 = vmatprep.subr.bf16.mxu0 %v2666_v0 }
  0x82   :  { %2178 = vmatpush3.bf16.msra.mxu1 %v2366_v15  ;;  %2158 = vmatpush3.bf16.msra.mxu0 %v2367_v18 }
  0x83   :  { %2203 = vmatprep.subr.bf16.mxu1 %v2666_v0  ;;  %2183 = vmatprep.subr.bf16.mxu0 %v2666_v0 }
  0x85   :  { %2180 = vmatmul.mubr.bf16.vlgmr.msra.gmra.mxu1 %v2812_v19  ;;  %2160 = vmatmul.mubr.bf16.vlgmr.msra.gmra.mxu0 %v2812_v19 }
  0x86   :  { %2205 = vmatprep.mubr.msk.bf16.mxu1 %vm2667_vm0, %v2666_v0  ;;  %2199 = vmatprep.mubr.msk.bf16.mxu0 %vm2667_vm0, %v2666_v0 }
  0x87   :  { %2184 = vmatpush3.bf16.msra.mxu0 %v2368_v36 }
  0x88   :  { %2185 = vmatprep.subr.bf16.mxu0 %v2666_v0 }
  0x8b   :  { %2186 = vmatpush3.bf16.msra.mxu0 %v2369_v37 }
  0x8c   :  { %2187 = vmatprep.subr.bf16.mxu0 %v2666_v0 }
  0x8f   :  { %2188 = vmatpush3.bf16.msra.mxu0 %v2370_v38 }
  0x90   :  { %2189 = vmatprep.subr.bf16.mxu0 %v2666_v0 }
  0x93   :  { %2190 = vmatpush3.bf16.msra.mxu0 %v2371_v39 }
  0x94   :  { %2191 = vmatprep.subr.bf16.mxu0 %v2666_v0 }
  0x97   :  { %2192 = vmatpush3.bf16.msra.mxu0 %v2372_v40 }
  0x98   :  { %2193 = vmatprep.subr.bf16.mxu0 %v2666_v0 }
  0x9b   :  { %2194 = vmatpush3.bf16.msra.mxu0 %v2373_v41 }
  0x9c   :  { %2195 = vmatprep.subr.bf16.mxu0 %v2666_v0 }
  0x9f   :  { %2196 = vmatpush3.bf16.msra.mxu0 %v2374_v42 }
  0xa0   :  { %2197 = vmatprep.subr.bf16.mxu0 %v2666_v0 }
  0xa3   :  { %2198 = vmatpush3.bf16.msra.mxu0 %v2375_v43 }
  0xa4   :  { %2251 = vmatprep.subr.bf16.mxu0 %v2666_v0 }
  0xa6   :  { %2200 = vmatmul.mubr.bf16.vlgmr.msra.gmra.mxu0 %v2812_v19 }
  0xa7   :  { %2253 = vmatprep.mubr.msk.bf16.mxu0 %vm2667_vm0, %v2666_v0 }
 0x145   :  { %v364_v20 = vpop.f32.mrf.mxu1  ;;  %v257_v22 = vpop.f32.mrf.mxu0 }
 0x146   :  { %v2049_v21 = vpack.c.bf16 %v364_v20, %v364_v20  ;;  %v264_v23 = vmul.f32 0.17677669, %v257_v22 }
 0x147   :  { %v2181_v24 = vpop.f32.mrf.mxu1  ;;  %v2161_v25 = vpop.f32.mrf.mxu0 }
 0x148   :  { %506 = vrot.lane.b32.xlu0 %v2049_v21, %s2668_s10  ;;  %v535_v26 = vsel %vm530_vm1, %v2049_v21, 0  ;;  %v2047_v27 = vpack.c.bf16 %v264_v23, %v264_v23 }
 0x149   :  { %v367_v28 = vpop.f32.mrf.mxu1  ;;  %2204 = vmatpush3.bf16.xpose.msra.mxu1 %v535_v26  ;;  %v260_v30 = vpop.f32.mrf.mxu0 }
 0x14a   :  { %v2050_v29 = vpack.c.bf16 %v367_v28, %v367_v28  ;;  %2209 = vmatprep.subr.bf16.mxu1 %v2666_v0  ;;  %v265_v31 = vmul.f32 0.17677669, %v260_v30 }
 0x14b   :  { %v2182_v32 = vpop.f32.mrf.mxu1  ;;  %v2162_v33 = vpop.f32.mrf.mxu0 }
 0x14c   :  { %508 = vrot.lane.b32.xlu1 %v2050_v29, %s2668_s10  ;;  %494 = vrot.lane.b32.xlu0 %v2047_v27, %s2668_s10  ;;  %v2048_v34 = vpack.c.bf16 %v265_v31, %v265_v31  ;;  %v581_v35 = vsel %vm530_vm1, %v2050_v29, 0 }
 0x150   :  { %510 = vrot.lane.b32.xlu0 %v2049_v21, %s2655_s16  ;;  %2206 = vmatmul.mubr.msk.bf16.vlgmr.msra.gmra.mxu1 %vm530_vm1, %v2047_v27 }
 0x151   :  { %496 = vrot.lane.b32.xlu1 %v2048_v34, %s2668_s10  ;;  %2210 = vmatpush3.bf16.xpose.msra.mxu1 %v581_v35 }
 0x152   :  { %2211 = vmatprep.mubr.msk.bf16.mxu1 %vm2667_vm0, %v2666_v0  ;;  %2215 = vmatprep.subr.bf16.mxu1 %v2666_v0 }
 0x154   :  { %512 = vrot.lane.b32.xlu0 %v2050_v29, %s2655_s16 }
 0x155   :  { %498 = vrot.lane.b32.xlu1 %v2047_v27, %s2655_s16 }
 0x158   :  { %514 = vrot.lane.b32.xlu0 %v2049_v21, %s2669_s11  ;;  %2212 = vmatmul.mubr.msk.bf16.vlgmr.msra.gmra.mxu1 %vm530_vm1, %v2048_v34 }
 0x159   :  { %500 = vrot.lane.b32.xlu1 %v2048_v34, %s2655_s16  ;;  %2217 = vmatprep.mubr.msk.bf16.mxu1 %vm2667_vm0, %v2666_v0 }
 0x15c   :  { %516 = vrot.lane.b32.xlu0 %v2050_v29, %s2669_s11 }
 0x15d   :  { %502 = vrot.lane.b32.xlu1 %v2047_v27, %s2669_s11 }
 0x161   :  { %504 = vrot.lane.b32.xlu1 %v2048_v34, %s2669_s11 }
 0x166   :  { %v469_v9 = vpop.f32.mrf.mxu0 }
 0x167   :  { %v2890_v11 = vpack.c.bf16 %v469_v9, %v469_v9 }
 0x168   :  { %v2201_v10 = vpop.f32.mrf.mxu0 }
 0x169   :  { %v1001_v14 = vsel %vm999_vm3, %v2890_v11, 0 }
 0x16a   :  { %v472_v12 = vpop.f32.mrf.mxu0  ;;  %2252 = vmatpush3.bf16.msra.mxu0 %v1001_v14 }
 0x16b   :  { %v2892_v13 = vpack.c.bf16 %v472_v12, %v472_v12  ;;  %2263 = vmatprep.subr.bf16.mxu0 %v2666_v0 }
 0x16c   :  { %v2202_v15 = vpop.f32.mrf.mxu0 }
 0x16d   :  { %v1047_v16 = vsel %vm999_vm3, %v2892_v13, 0 }
 0x1ba   :  { %v507_v44 = vpop.permute.xlu0 %506 }
 0x1bb   :  { %v627_v45 = vsel %vm530_vm1, %v507_v44, 0 }
 0x1bc   :  { %2216 = vmatpush3.bf16.xpose.msra.mxu1 %v627_v45 }
 0x1bd   :  { %2221 = vmatprep.subr.bf16.mxu1 %v2666_v0 }
 0x1be   :  { %v509_v46 = vpop.permute.xlu1 %508  ;;  %v495_v47 = vpop.permute.xlu0 %494 }
 0x1bf   :  { %v673_v48 = vsel %vm530_vm1, %v509_v46, 0 }
 0x1c2   :  { %v511_v49 = vpop.permute.xlu0 %510 }
 0x1c3   :  { %2218 = vmatmul.mubr.msk.bf16.vlgmr.msra.gmra.mxu1 %vm530_vm1, %v495_v47  ;;  %v497_v50 = vpop.permute.xlu1 %496  ;;  %v719_v51 = vsel %vm530_vm1, %v511_v49, 0 }
 0x1c4   :  { %2222 = vmatpush3.bf16.xpose.msra.mxu1 %v673_v48  ;;  %2223 = vmatprep.mubr.msk.bf16.mxu1 %vm2667_vm0, %v2666_v0 }
 0x1c5   :  { %2227 = vmatprep.subr.bf16.mxu1 %v2666_v0 }
 0x1c6   :  { %v513_v52 = vpop.permute.xlu0 %512 }
 0x1c7   :  { %v499_v53 = vpop.permute.xlu1 %498  ;;  %v765_v54 = vsel %vm530_vm1, %v513_v52, 0 }
 0x1ca   :  { %v515_v55 = vpop.permute.xlu0 %514 }
 0x1cb   :  { %2224 = vmatmul.mubr.msk.bf16.vlgmr.msra.gmra.mxu1 %vm530_vm1, %v497_v50  ;;  %v501_v56 = vpop.permute.xlu1 %500  ;;  %v811_v57 = vsel %vm530_vm1, %v515_v55, 0 }
 0x1cc   :  { %2228 = vmatpush3.bf16.xpose.msra.mxu1 %v719_v51  ;;  %2229 = vmatprep.mubr.msk.bf16.mxu1 %vm2667_vm0, %v2666_v0 }
 0x1cd   :  { %2233 = vmatprep.subr.bf16.mxu1 %v2666_v0 }
 0x1ce   :  { %v517_v58 = vpop.permute.xlu0 %516 }
 0x1cf   :  { %v503_v59 = vpop.permute.xlu1 %502  ;;  %v857_v60 = vsel %vm530_vm1, %v517_v58, 0 }
 0x1d3   :  { %2230 = vmatmul.mubr.msk.bf16.vlgmr.msra.gmra.mxu1 %vm530_vm1, %v499_v53  ;;  %v505_v61 = vpop.permute.xlu1 %504 }
 0x1d4   :  { %2234 = vmatpush3.bf16.xpose.msra.mxu1 %v765_v54  ;;  %2235 = vmatprep.mubr.msk.bf16.mxu1 %vm2667_vm0, %v2666_v0 }
 0x1d5   :  { %2239 = vmatprep.subr.bf16.mxu1 %v2666_v0 }
 0x1db   :  { %2236 = vmatmul.mubr.msk.bf16.vlgmr.msra.gmra.mxu1 %vm530_vm1, %v501_v56 }
 0x1dc   :  { %2240 = vmatpush3.bf16.xpose.msra.mxu1 %v811_v57  ;;  %2241 = vmatprep.mubr.msk.bf16.mxu1 %vm2667_vm0, %v2666_v0 }
 0x1dd   :  { %2245 = vmatprep.subr.bf16.mxu1 %v2666_v0 }
 0x1e3   :  { %2242 = vmatmul.mubr.msk.bf16.vlgmr.msra.gmra.mxu1 %vm530_vm1, %v503_v59 }
 0x1e4   :  { %2246 = vmatpush3.bf16.xpose.msra.mxu1 %v857_v60  ;;  %2247 = vmatprep.mubr.msk.bf16.mxu1 %vm2667_vm0, %v2666_v0 }
 0x1e5   :  { %2257 = vmatprep.subr.bf16.mxu1 %v2666_v0 }
 0x1eb   :  { %2248 = vmatmul.mubr.msk.bf16.vlgmr.msra.gmra.mxu1 %vm530_vm1, %v505_v61 }
 0x1ec   :  { %2259 = vmatprep.mubr.msk.bf16.mxu1 %vm2667_vm0, %v2666_v0  ;;  %2258 = vmatpush3.bf16.msra.mxu1 %v1047_v16 }
 0x1ed   :  { %2269 = vmatprep.subr.bf16.mxu1 %v2666_v0 }
 0x210   :  { %v2885_v62 = vpop.f32.mrf.mxu1 }
 0x211   :  { %v900_v63 = vsel %vm899_vm2, %v2885_v62, -inf }
 0x212   :  { %901 = vmax.xlane.f32.xlu0 %v900_v63  ;;  %v2207_v1 = vpop.f32.mrf.mxu1 }
 0x214   :  { %v574_v2 = vpop.f32.mrf.mxu1 }
 0x216   :  { %v2208_v3 = vpop.f32.mrf.mxu1 }
 0x218   :  { %v617_v4 = vpop.f32.mrf.mxu1 }
 0x219   :  { %v903_v5 = vsel %vm899_vm2, %v617_v4, -inf }
 0x21a   :  { %904 = vmax.xlane.f32.xlu1 %v903_v5  ;;  %v2213_v6 = vpop.f32.mrf.mxu1 }
 0x21c   :  { %v620_v7 = vpop.f32.mrf.mxu1 }
 0x21e   :  { %v2214_v8 = vpop.f32.mrf.mxu1 }
 0x283   :  { %v663_v17 = vpop.f32.mrf.mxu1 }
 0x284   :  { %v906_v18 = vsel %vm899_vm2, %v663_v17, -inf }
 0x285   :  { %907 = vmax.xlane.f32.xlu0 %v906_v18  ;;  %v2219_v19 = vpop.f32.mrf.mxu1 }
 0x287   :  { %v666_v20 = vpop.f32.mrf.mxu1 }
 0x289   :  { %v2220_v21 = vpop.f32.mrf.mxu1 }
 0x28b   :  { %v709_v22 = vpop.f32.mrf.mxu1 }
 0x28c   :  { %v909_v23 = vsel %vm899_vm2, %v709_v22, -inf }
 0x28d   :  { %910 = vmax.xlane.f32.xlu0 %v909_v23  ;;  %v2225_v24 = vpop.f32.mrf.mxu1 }
 0x28f   :  { %v712_v25 = vpop.f32.mrf.mxu1 }
 0x291   :  { %v2226_v26 = vpop.f32.mrf.mxu1 }
 0x293   :  { %v2902_v27 = vpop.f32.mrf.mxu1 }
 0x294   :  { %v912_v28 = vsel %vm899_vm2, %v2902_v27, -inf }
 0x295   :  { %913 = vmax.xlane.f32.xlu1 %v912_v28  ;;  %v2231_v29 = vpop.f32.mrf.mxu1 }
 0x297   :  { %v758_v30 = vpop.f32.mrf.mxu1 }
 0x299   :  { %v2232_v31 = vpop.f32.mrf.mxu1 }
 0x29b   :  { %v801_v32 = vpop.f32.mrf.mxu1  ;;  %v902_v52 = vpop.xlane.xlu0 %901 }
 0x29c   :  { %v915_v33 = vsel %vm899_vm2, %v801_v32, -inf  ;;  %v924_v53 = vsub.f32 %v2885_v62, %v902_v52 }
 0x29d   :  { %916 = vmax.xlane.f32.xlu0 %v915_v33  ;;  %v2237_v34 = vpop.f32.mrf.mxu1 }
 0x29e   :  { %v932_v54 = vmul.f32 1.442695, %v924_v53 }
 0x29f   :  { %v804_v35 = vpop.f32.mrf.mxu1 }
 0x2a1   :  { %v2238_v36 = vpop.f32.mrf.mxu1 }
 0x2a3   :  { %v905_v37 = vpop.xlane.xlu1 %904  ;;  %v847_v38 = vpop.f32.mrf.mxu1 }
 0x2a4   :  { %v925_v39 = vsub.f32 %v617_v4, %v905_v37  ;;  %v918_v40 = vsel %vm899_vm2, %v847_v38, -inf }
 0x2a5   :  { %919 = vmax.xlane.f32.xlu1 %v918_v40  ;;  %v2243_v41 = vpop.f32.mrf.mxu1 }
 0x2a6   :  { %v934_v42 = vmul.f32 1.442695, %v925_v39 }
 0x2a7   :  { %v850_v43 = vpop.f32.mrf.mxu1 }
 0x2a8   :  { %2424 = vpow2.f32 %v934_v42 }
 0x2a9   :  { %v2244_v44 = vpop.f32.mrf.mxu1  ;;  %2426 = vpow2.f32 %v932_v54 }
 0x2ab   :  { %v893_v45 = vpop.f32.mrf.mxu1 }
 0x2ac   :  { %v921_v46 = vsel %vm899_vm2, %v893_v45, -inf }
 0x2ad   :  { %922 = vmax.xlane.f32.xlu0 %v921_v46  ;;  %v2249_v47 = vpop.f32.mrf.mxu1 }
 0x2af   :  { %v896_v48 = vpop.f32.mrf.mxu1 }
 0x2b1   :  { %v2250_v49 = vpop.f32.mrf.mxu1 }
 0x2b5   :  { %v2425_v50 = vpop.eup %2424 }
 0x2b6   :  { %518 = vrot.lane.b32.xlu1 %v2890_v11, %s2668_s10  ;;  %v951_v51 = vsel %vm899_vm2, %v2425_v50, 0.0  ;;  %v2427_v55 = vpop.eup %2426 }
 0x2b7   :  { %952 = vadd.xlane.f32.xlu0 %v951_v51  ;;  %v948_v56 = vsel %vm899_vm2, %v2427_v55, 0.0 }
 0x2da   :  { %949 = vadd.xlane.f32.xlu1 %v948_v56 }
 0x30e   :  { %v908_v57 = vpop.xlane.xlu0 %907 }
 0x30f   :  { %v926_v58 = vsub.f32 %v663_v17, %v908_v57 }
 0x311   :  { %v936_v59 = vmul.f32 1.442695, %v926_v58 }
 0x313   :  { %2428 = vpow2.f32 %v936_v59 }
 0x316   :  { %v911_v60 = vpop.xlane.xlu0 %910 }
 0x317   :  { %v927_v61 = vsub.f32 %v709_v22, %v911_v60 }
 0x319   :  { %v938_v63 = vmul.f32 1.442695, %v927_v61 }
 0x31b   :  { %2430 = vpow2.f32 %v938_v63 }
 0x31e   :  { %v914_v6 = vpop.xlane.xlu1 %913 }
 0x31f   :  { %v928_v8 = vsub.f32 %v2902_v27, %v914_v6 }
 0x320   :  { %v2914_v1 = vpop.eup %2428 }
 0x321   :  { %v954_v2 = vsel %vm899_vm2, %v2914_v1, 0.0  ;;  %v940_v12 = vmul.f32 1.442695, %v928_v8 }
 0x322   :  { %955 = vadd.xlane.f32.xlu1 %v954_v2 }
 0x326   :  { %v917_v4 = vpop.xlane.xlu0 %916 }
 0x327   :  { %v929_v10 = vsub.f32 %v801_v32, %v917_v4 }
 0x328   :  { %v2918_v62 = vpop.eup %2430 }
 0x329   :  { %v957_v3 = vsel %vm899_vm2, %v2918_v62, 0.0  ;;  %v942_v15 = vmul.f32 1.442695, %v929_v10 }
 0x32a   :  { %958 = vadd.xlane.f32.xlu0 %v957_v3 }
 0x32e   :  { %v920_v9 = vpop.xlane.xlu1 %919 }
 0x32f   :  { %v930_v14 = vsub.f32 %v847_v38, %v920_v9 }
 0x331   :  { %v944_v16 = vmul.f32 1.442695, %v930_v14 }
 0x332   :  { %v519_v26 = vpop.permute.xlu1 %518 }
 0x333   :  { %522 = vrot.lane.b32.xlu1 %v2890_v11, %s2655_s16  ;;  %v1093_v35 = vsel %vm999_vm3, %v519_v26, 0 }
 0x336   :  { %v923_v5 = vpop.xlane.xlu0 %922 }
 0x337   :  { %524 = vrot.lane.b32.xlu1 %v2892_v13, %s2655_s16  ;;  %v931_v17 = vsub.f32 %v893_v45, %v923_v5 }
 0x339   :  { %v946_v19 = vmul.f32 1.442695, %v931_v17 }
 0x340   :  { %v953_v7 = vpop.xlane.xlu0 %952  ;;  %520 = vrot.lane.b32.xlu0 %v2892_v13, %s2668_s10 }
 0x341   :  { %2432 = vrcp.f32 %v953_v7 }
 0x342   :  { %2434 = vpow2.f32 %v940_v12 }
 0x343   :  { %2436 = vpow2.f32 %v942_v15 }
 0x344   :  { %2438 = vpow2.f32 %v944_v16  ;;  %v2376_v16 = vld [vmem:[#allocation10 + $0x38] sm:$0xff]  }
 0x345   :  { %2440 = vpow2.f32 %v946_v19 }
 0x34e   :  { %v2433_v18 = vpop.eup %2432 }
 0x34f   :  { %v975_v20 = vmul.f32 %v2433_v18, %v2425_v50  ;;  %v2435_v22 = vpop.eup %2434  ;;  %v2377_v18 = vld [vmem:[#allocation10 + $0x30] sm:$0xff]  }
 0x350   :  { %v2932_v23 = vpop.eup %2436  ;;  %v960_v24 = vsel %vm899_vm2, %v2435_v22, 0.0 }
 0x351   :  { %v989_v21 = vpack.c.bf16 %v975_v20, %v975_v20  ;;  %v2935_v25 = vpop.eup %2438  ;;  %v963_v28 = vsel %vm899_vm2, %v2932_v23, 0.0 }
 0x352   :  { %v966_v27 = vsel %vm899_vm2, %v2935_v25, 0.0  ;;  %v2941_v29 = vpop.eup %2440 }
 0x353   :  { %2260 = vmatmul.mubr.msk.bf16.vlgmr.msra.gmra.mxu1 %vm899_vm2, %v989_v21  ;;  %v969_v30 = vsel %vm899_vm2, %v2941_v29, 0.0  ;;  %v2378_v21 = vld [vmem:[#allocation10 + $0x28] sm:$0xff]  }
 0x354   :  { %2271 = vmatprep.mubr.msk.bf16.mxu1 %vm2667_vm0, %v2666_v0 }
 0x35b   :  { %961 = vadd.xlane.f32.xlu1 %v960_v24 }
 0x35f   :  { %967 = vadd.xlane.f32.xlu1 %v966_v27  ;;  %964 = vadd.xlane.f32.xlu0 %v963_v28  ;;  %v2380_v28 = vld [vmem:[#allocation10 + $0x18] sm:$0xff]  }
 0x363   :  { %v950_v31 = vpop.xlane.xlu1 %949  ;;  %970 = vadd.xlane.f32.xlu0 %v969_v30  ;;  %v2382_v30 = vld [vmem:[#allocation10 + $0x8] sm:$0xff]  }
 0x364   :  { %2442 = vrcp.f32 %v950_v31 }
 0x370   :  { %528 = vrot.lane.b32.xlu1 %v2892_v13, %s2669_s11 }
 0x371   :  { %v2443_v32 = vpop.eup %2442 }
 0x372   :  { %v973_v33 = vmul.f32 %v2443_v32, %v2427_v55 }
 0x374   :  { %v988_v34 = vpack.c.bf16 %v973_v33, %v973_v33 }
 0x376   :  { %2254 = vmatmul.mubr.msk.bf16.vlgmr.msra.gmra.mxu0 %vm899_vm2, %v988_v34  ;;  %v2383_v34 = vld [vmem:[#allocation10] sm:$0xff]  }
 0x377   :  { %2264 = vmatpush3.bf16.msra.mxu0 %v1093_v35  ;;  %2265 = vmatprep.mubr.msk.bf16.mxu0 %vm2667_vm0, %v2666_v0 }
 0x378   :  { %2275 = vmatprep.subr.bf16.mxu0 %v2666_v0 }
 0x379   :  { %526 = vrot.lane.b32.xlu0 %v2890_v11, %s2669_s11 }
 0x3ab   :  { %v956_v36 = vpop.xlane.xlu1 %955 }
 0x3ac   :  { %2444 = vrcp.f32 %v956_v36 }
 0x3af   :  { %v523_v41 = vpop.permute.xlu1 %522 }
 0x3b0   :  { %v1185_v43 = vsel %vm999_vm3, %v523_v41, 0 }
 0x3b3   :  { %v959_v37 = vpop.xlane.xlu0 %958  ;;  %v525_v45 = vpop.permute.xlu1 %524 }
 0x3b4   :  { %2446 = vrcp.f32 %v959_v37  ;;  %v1231_v47 = vsel %vm999_vm3, %v525_v45, 0 }
 0x3b7   :  { %v521_v13 = vpop.permute.xlu0 %520 }
 0x3b8   :  { %v1139_v38 = vsel %vm999_vm3, %v521_v13, 0 }
 0x3b9   :  { %v2445_v39 = vpop.eup %2444  ;;  %2270 = vmatpush3.bf16.msra.mxu1 %v1139_v38 }
 0x3ba   :  { %v977_v40 = vmul.f32 %v2445_v39, %v2914_v1  ;;  %2281 = vmatprep.subr.bf16.mxu1 %v2666_v0 }
 0x3bc   :  { %v990_v42 = vpack.c.bf16 %v977_v40, %v977_v40 }
 0x3be   :  { %2266 = vmatmul.mubr.msk.bf16.vlgmr.msra.gmra.mxu0 %vm899_vm2, %v990_v42 }
 0x3bf   :  { %2276 = vmatpush3.bf16.msra.mxu0 %v1185_v43  ;;  %2277 = vmatprep.mubr.msk.bf16.mxu0 %vm2667_vm0, %v2666_v0 }
 0x3c0   :  { %2287 = vmatprep.subr.bf16.mxu0 %v2666_v0 }
 0x3c1   :  { %v2447_v11 = vpop.eup %2446 }
 0x3c2   :  { %v979_v44 = vmul.f32 %v2447_v11, %v2918_v62 }
 0x3c4   :  { %v991_v46 = vpack.c.bf16 %v979_v44, %v979_v44 }
 0x3c6   :  { %2272 = vmatmul.mubr.msk.bf16.vlgmr.msra.gmra.mxu1 %vm899_vm2, %v991_v46 }
 0x3c7   :  { %2282 = vmatpush3.bf16.msra.mxu1 %v1231_v47  ;;  %2283 = vmatprep.mubr.msk.bf16.mxu1 %vm2667_vm0, %v2666_v0 }
 0x3c8   :  { %2293 = vmatprep.subr.bf16.mxu1 %v2666_v0 }
 0x3e4   :  { %v962_v48 = vpop.xlane.xlu1 %961 }
 0x3e5   :  { %2448 = vrcp.f32 %v962_v48 }
 0x3e8   :  { %v968_v49 = vpop.xlane.xlu1 %967  ;;  %v965_v50 = vpop.xlane.xlu0 %964 }
 0x3e9   :  { %2450 = vrcp.f32 %v968_v49 }
 0x3ea   :  { %2452 = vrcp.f32 %v965_v50 }
 0x3ec   :  { %v971_v51 = vpop.xlane.xlu0 %970  ;;  %v529_v60 = vpop.permute.xlu1 %528 }
 0x3ed   :  { %2454 = vrcp.f32 %v971_v51  ;;  %v1323_v2 = vsel %vm999_vm3, %v529_v60, 0 }
 0x3f0   :  { %v527_v54 = vpop.permute.xlu0 %526 }
 0x3f1   :  { %v1277_v58 = vsel %vm999_vm3, %v527_v54, 0 }
 0x3f2   :  { %v2449_v52 = vpop.eup %2448 }
 0x3f3   :  { %v981_v53 = vmul.f32 %v2449_v52, %v2435_v22 }
 0x3f5   :  { %v992_v55 = vpack.c.bf16 %v981_v53, %v981_v53 }
 0x3f6   :  { %v2451_v56 = vpop.eup %2450 }
 0x3f7   :  { %v2453_v57 = vpop.eup %2452  ;;  %2278 = vmatmul.mubr.msk.bf16.vlgmr.msra.gmra.mxu0 %vm899_vm2, %v992_v55  ;;  %v985_v61 = vmul.f32 %v2451_v56, %v2935_v25  ;;  %v2379_v25 = vld [vmem:[#allocation10 + $0x20] sm:$0xff]  }
 0x3f8   :  { %2288 = vmatpush3.bf16.msra.mxu0 %v1277_v58  ;;  %v983_v59 = vmul.f32 %v2453_v57, %v2932_v23  ;;  %2289 = vmatprep.mubr.msk.bf16.mxu0 %vm2667_vm0, %v2666_v0 }
 0x3f9   :  { %2299 = vmatprep.subr.bf16.mxu0 %v2666_v0  ;;  %v994_v62 = vpack.c.bf16 %v985_v61, %v985_v61 }
 0x3fa   :  { %v993_v63 = vpack.c.bf16 %v983_v59, %v983_v59  ;;  %v2455_v1 = vpop.eup %2454 }
 0x3fb   :  { %v987_v3 = vmul.f32 %v2455_v1, %v2941_v29  ;;  %v2381_v29 = vld [vmem:[#allocation10 + $0x10] sm:$0xff]  }
 0x3fc   :  { %2284 = vmatmul.mubr.msk.bf16.vlgmr.msra.gmra.mxu1 %vm899_vm2, %v993_v63  ;;  %v2386_v1 = vld [vmem:[#allocation11 + $0x74] ss:$8 sps:$4 sm:$0xff]  }
 0x3fd   :  { %2294 = vmatpush3.bf16.msra.mxu1 %v1323_v2  ;;  %2295 = vmatprep.mubr.msk.bf16.mxu1 %vm2667_vm0, %v2666_v0  ;;  %v995_v4 = vpack.c.bf16 %v987_v3, %v987_v3  ;;  %v2384_v2 = vld [vmem:[#allocation11 + $0x70] ss:$8 sps:$4 sm:$0xff]   ;;  %v2387_v3 = vld [vmem:[#allocation11 + $0x60] ss:$8 sps:$4 sm:$0xff]  }
 0x3fe   :  { %1663 = vmatprep.subr.bf16.mxu1 %v2386_v1 }
 0x3ff   :  { %2290 = vmatmul.mubr.msk.bf16.vlgmr.msra.gmra.mxu0 %vm899_vm2, %v994_v62  ;;  %v2389_v62 = vld [vmem:[#allocation11 + $0x64] ss:$8 sps:$4 sm:$0xff]  }
 0x400   :  { %2315 = vmatprep.mubr.msk.bf16.mxu0 %vm2667_vm0, %v2666_v0  ;;  %2300 = vmatpush3.bf16.msra.mxu0 %v2376_v16  ;;  %v2405_v16 = vld [vmem:[#allocation11] ss:$8 sps:$4 sm:$0xff]  }
 0x401   :  { %2301 = vmatprep.subr.bf16.mxu0 %v2666_v0 }
 0x404   :  { %2296 = vmatmul.mubr.msk.bf16.vlgmr.msra.gmra.mxu1 %vm899_vm2, %v995_v4  ;;  %2302 = vmatpush3.bf16.msra.mxu0 %v2377_v18  ;;  %v2392_v4 = vld [vmem:[#allocation11 + $0x54] ss:$8 sps:$4 sm:$0xff]   ;;  %v2670_v18 = vmov 0  }
 0x405   :  { %2303 = vmatprep.subr.bf16.mxu0 %v2666_v0  ;;  %1664 = vmatpush1.bf16.msra.mxu1 %v2384_v2 }
 0x406   :  { %1665 = vmatprep.subr.bf16.mxu1 %v2389_v62  ;;  %1695 = vmatprep.mubr.bf16.mxu1 %v2670_v18 }
 0x408   :  { %2304 = vmatpush3.bf16.msra.mxu0 %v2378_v21  ;;  %v2410_v21 = vld [vmem:[#allocation13 + $0x70] sm:$0xff]  }
 0x409   :  { %2305 = vmatprep.subr.bf16.mxu0 %v2666_v0  ;;  %1666 = vmatpush1.bf16.msra.mxu1 %v2387_v3 }
 0x40a   :  { %1667 = vmatprep.subr.bf16.mxu1 %v2392_v4 }
 0x40c   :  { %2306 = vmatpush3.bf16.msra.mxu0 %v2379_v25  ;;  %v2414_v25 = vld [vmem:[#allocation13 + $0x60] sm:$0xff]  }
 0x40d   :  { %2307 = vmatprep.subr.bf16.mxu0 %v2666_v0 }
 0x410   :  { %2308 = vmatpush3.bf16.msra.mxu0 %v2380_v28  ;;  %v2417_v28 = vld [vmem:[#allocation13 + $0x18] sm:$0xff]  }
 0x411   :  { %2309 = vmatprep.subr.bf16.mxu0 %v2666_v0 }
 0x413   :  { %v2984_v5 = vpop.f32.mrf.mxu1 }
 0x414   :  { %2310 = vmatpush3.bf16.msra.mxu0 %v2381_v29  ;;  %v2001_v29 = vld [vmem:[%s3031_s5] ss:$0 sm:$0xff] }
 0x415   :  { %v2261_v6 = vpop.f32.mrf.mxu1  ;;  %2311 = vmatprep.subr.bf16.mxu0 %v2666_v0 }
 0x416   :  { %v2395_v6 = vld [vmem:[#allocation11 + $0x44] ss:$8 sps:$4 sm:$0xff]  }
 0x417   :  { %v1086_v7 = vpop.f32.mrf.mxu1 }
 0x418   :  { %2312 = vmatpush3.bf16.msra.mxu0 %v2382_v30  ;;  %v2393_v7 = vld [vmem:[#allocation11 + $0x40] ss:$8 sps:$4 sm:$0xff]  }
 0x419   :  { %v2262_v8 = vpop.f32.mrf.mxu1  ;;  %2313 = vmatprep.subr.bf16.mxu0 %v2666_v0 }
 0x41a   :  { %v2398_v8 = vld [vmem:[#allocation11 + $0x34] ss:$8 sps:$4 sm:$0xff]  }
 0x41c   :  { %2314 = vmatpush3.bf16.msra.mxu0 %v2383_v34 }
 0x436   :  { %v2986_v9 = vpop.f32.mrf.mxu0 }
 0x438   :  { %v2255_v10 = vpop.f32.mrf.mxu0 }
 0x439   :  { %v2401_v10 = vld [vmem:[#allocation11 + $0x24] ss:$8 sps:$4 sm:$0xff]  }
 0x43a   :  { %v1040_v12 = vpop.f32.mrf.mxu0 }
 0x43b   :  { %v2399_v12 = vld [vmem:[#allocation11 + $0x20] ss:$8 sps:$4 sm:$0xff]  }
 0x43c   :  { %v2256_v14 = vpop.f32.mrf.mxu0 }
 0x43d   :  { %v2404_v14 = vld [vmem:[#allocation11 + $0x14] ss:$8 sps:$4 sm:$0xff]  }
 0x47e   :  { %v1129_v15 = vpop.f32.mrf.mxu0 }
 0x480   :  { %v2267_v17 = vpop.f32.mrf.mxu0 }
 0x481   :  { %v2407_v17 = vld [vmem:[#allocation11 + $0x4] ss:$8 sps:$4 sm:$0xff]  }
 0x482   :  { %v1132_v19 = vpop.f32.mrf.mxu0 }
 0x483   :  { %v2408_v19 = vld [vmem:[#allocation13 + $0x78] sm:$0xff]  }
 0x484   :  { %v2268_v20 = vpop.f32.mrf.mxu0  ;;  %2121 = vmatprep.subr.bf16.mxu0 %v2408_v19 }
 0x485   :  { %v2409_v20 = vld [vmem:[#allocation13 + $0x38] sm:$0xff]  }
 0x486   :  { %v1175_v22 = vpop.f32.mrf.mxu1 }
 0x487   :  { %v2337_v23 = vpack.i.bf16 %v1175_v22, %v1129_v15  ;;  %v2402_v15 = vld [vmem:[#allocation11 + $0x10] ss:$8 sps:$4 sm:$0xff]  }
 0x488   :  { %v2273_v24 = vpop.f32.mrf.mxu1  ;;  %v2411_v22 = vld [vmem:[#allocation13 + $0x30] sm:$0xff]  }
 0x489   :  { %2338 = vrot.lane.b32.xlu0 %v2337_v23, %s2669_s11  ;;  %v2412_v23 = vld [vmem:[#allocation13 + $0x68] sm:$0xff]  }
 0x48a   :  { %v1178_v26 = vpop.f32.mrf.mxu1  ;;  %v2413_v24 = vld [vmem:[#allocation13 + $0x28] sm:$0xff]  }
 0x48b   :  { %v2415_v26 = vld [vmem:[#allocation13 + $0x20] sm:$0xff]  }
 0x48c   :  { %v2274_v27 = vpop.f32.mrf.mxu1 }
 0x48d   :  { %v2416_v27 = vld [vmem:[#allocation13 + $0x58] sm:$0xff]  }
 0x4b7   :  { %v1221_v31 = vpop.f32.mrf.mxu0 }
 0x4b9   :  { %v2279_v32 = vpop.f32.mrf.mxu0 }
 0x4bb   :  { %v1224_v33 = vpop.f32.mrf.mxu0 }
 0x4bc   :  { %v1267_v35 = vpop.f32.mrf.mxu1 }
 0x4bd   :  { %v2342_v36 = vpack.i.bf16 %v1267_v35, %v1221_v31  ;;  %v2280_v37 = vpop.f32.mrf.mxu0 }
 0x4be   :  { %v2285_v13 = vpop.f32.mrf.mxu1 }
 0x4bf   :  { %2343 = vrot.lane.b32.xlu1 %v2342_v36, %s2655_s16  ;;  %v1313_v38 = vpop.f32.mrf.mxu0  ;;  %v2460_v36 = vld [vmem:[#allocation2] sm:$0xff]  ;;  %v2461_v13 = vld [vmem:[#allocation2 + $0x8] sm:$0xff] }
 0x4c0   :  { %v1270_v39 = vpop.f32.mrf.mxu1 }
 0x4c1   :  { %v2291_v40 = vpop.f32.mrf.mxu0 }
 0x4c2   :  { %v2286_v41 = vpop.f32.mrf.mxu1 }
 0x4c3   :  { %v1316_v42 = vpop.f32.mrf.mxu0 }
 0x4c4   :  { %v1359_v43 = vpop.f32.mrf.mxu1 }
 0x4c5   :  { %v2347_v11 = vpack.i.bf16 %v1359_v43, %v1313_v38  ;;  %v2292_v44 = vpop.f32.mrf.mxu0 }
 0x4c6   :  { %v2297_v45 = vpop.f32.mrf.mxu1 }
 0x4c7   :  { %2348 = vrot.lane.b32.xlu0 %v2347_v11, %s2668_s10 }
 0x4c8   :  { %v1362_v0 = vpop.f32.mrf.mxu1 }
 0x4ca   :  { %v2298_v46 = vpop.f32.mrf.mxu1 }
 0x4fb   :  { %v2339_v47 = vpop.permute.xlu0 %2338 }
 0x4fc   :  { %v2341_v49 = vunpack.i.h.bf16 %v2339_v47  ;;  %v2340_v50 = vunpack.i.l.bf16 %v2339_v47 }
 0x4fe   :  { %v1390_v54 = vsel %vm530_vm1, %v2984_v5, %v2341_v49  ;;  %v1389_v55 = vsel %vm530_vm1, %v2986_v9, %v2340_v50  ;;  %v2390_v5 = vld [vmem:[#allocation11 + $0x50] ss:$8 sps:$4 sm:$0xff]  }
 0x4ff   :  { %1668 = vmatpush1.bf16.msra.mxu1 %v2390_v5  ;;  %v2396_v9 = vld [vmem:[#allocation11 + $0x30] ss:$8 sps:$4 sm:$0xff]  }
 0x500   :  { %1669 = vmatprep.subr.bf16.mxu1 %v2395_v6  ;;  %v2418_v5 = vld [vmem:[#allocation13 + $0x50] sm:$0xff]  }
 0x501   :  { %v2419_v6 = vld [vmem:[#allocation13 + $0x10] sm:$0xff]  }
 0x503   :  { %1670 = vmatpush1.bf16.msra.mxu1 %v2393_v7  ;;  %v2420_v7 = vld [vmem:[#allocation13 + $0x48] sm:$0xff]  }
 0x504   :  { %1671 = vmatprep.subr.bf16.mxu1 %v2398_v8  ;;  %v2421_v8 = vld [vmem:[#allocation13 + $0x8] sm:$0xff]  }
 0x507   :  { %1672 = vmatpush1.bf16.msra.mxu1 %v2396_v9  ;;  %v2422_v9 = vld [vmem:[#allocation13 + $0x40] sm:$0xff]  }
 0x508   :  { %1673 = vmatprep.subr.bf16.mxu1 %v2401_v10  ;;  %v2423_v10 = vld [vmem:[#allocation13] sm:$0xff]  }
 0x50b   :  { %1674 = vmatpush1.bf16.msra.mxu1 %v2399_v12  ;;  %v1573_v12 = vlaneseq }
 0x50c   :  { %1675 = vmatprep.subr.bf16.mxu1 %v2404_v14 }
 0x50d   :  { %v1574_v14 = vshrl.u32 %v1573_v12, 7 }
 0x50f   :  { %1676 = vmatpush1.bf16.msra.mxu1 %v2402_v15  ;;  %v1579_v15 = vsub.s32 1, %v1574_v14 }
 0x510   :  { %1677 = vmatprep.subr.bf16.mxu1 %v2407_v17  ;;  %v1571_v17 = vld [vmem:[%s3035_s9] sm:$0x3] }
 0x511   :  { %v1580_v19 = vrot.slane %v1571_v17, %v1579_v15 }
 0x513   :  { %1678 = vmatpush1.bf16.msra.mxu1 %v2405_v16  ;;  %v1575_v16 = vsub.s32 0, %v1574_v14 }
 0x531   :  { %v2344_v48 = vpop.permute.xlu1 %2343 }
 0x532   :  { %v2346_v51 = vunpack.i.h.bf16 %v2344_v48  ;;  %v2345_v52 = vunpack.i.l.bf16 %v2344_v48 }
 0x534   :  { %v1393_v58 = vsel %vm1391_vm4, %v1390_v54, %v2346_v51  ;;  %v1392_v59 = vsel %vm1391_vm4, %v1389_v55, %v2345_v52 }
 0x539   :  { %v2349_v53 = vpop.permute.xlu0 %2348 }
 0x53a   :  { %v2351_v56 = vunpack.i.h.bf16 %v2349_v53  ;;  %v2350_v57 = vunpack.i.l.bf16 %v2349_v53 }
 0x53c   :  { %v1396_v60 = vsel %vm1394_vm5, %v1393_v58, %v2351_v56  ;;  %v1395_v61 = vsel %vm1394_vm5, %v1392_v59, %v2350_v57  ;;  %v2010_v59 = vld [vmem:[%s3032_s6] ss:$0 sm:$0xff] }
 0x53d   :  { %v1397_v63 = vpack.c.bf16 %v1396_v60, %v1395_v61 }
 0x53f   :  { %2316 = vmatmul.mubr.bf16.vlgmr.msra.gmra.mxu0 %v1397_v63  ;;  %v2011_v63 = vld [vmem:[%s3033_s7] ss:$0 sm:$0xff] }
 0x540   :  { %2122 = vmatpush3.bf16.msra.mxu0 %v2409_v20  ;;  %v1576_v20 = vrot.slane %v1571_v17, %v1575_v16 }
 0x541   :  { %2123 = vmatprep.subr.bf16.mxu0 %v2410_v21 }
 0x544   :  { %2124 = vmatpush3.bf16.msra.mxu0 %v2411_v22 }
 0x545   :  { %2125 = vmatprep.subr.bf16.mxu0 %v2412_v23 }
 0x548   :  { %2126 = vmatpush3.bf16.msra.mxu0 %v2413_v24 }
 0x549   :  { %2127 = vmatprep.subr.bf16.mxu0 %v2414_v25 }
 0x54c   :  { %2128 = vmatpush3.bf16.msra.mxu0 %v2415_v26 }
 0x54d   :  { %2129 = vmatprep.subr.bf16.mxu0 %v2416_v27 }
 0x550   :  { %2130 = vmatpush3.bf16.msra.mxu0 %v2417_v28 }
 0x551   :  { %2131 = vmatprep.subr.bf16.mxu0 %v2418_v5 }
 0x554   :  { %2132 = vmatpush3.bf16.msra.mxu0 %v2419_v6 }
 0x555   :  { %2133 = vmatprep.subr.bf16.mxu0 %v2420_v7 }
 0x558   :  { %2134 = vmatpush3.bf16.msra.mxu0 %v2421_v8 }
 0x559   :  { %2135 = vmatprep.subr.bf16.mxu0 %v2422_v9 }
 0x55c   :  { %2136 = vmatpush3.bf16.msra.mxu0 %v2423_v10 }
 0x5ff   :  { %v1503_v30 = vpop.f32.mrf.mxu0 }
 0x600   :  { %v1504_v32 = vadd.f32 %v2001_v29, %v1503_v30 }
 0x601   :  { %v2317_v31 = vpop.f32.mrf.mxu0 }
 0x602   :  { %v1512_v37 = vadd.f32 %v2460_v36, %v1504_v32 }
 0x603   :  { %v1506_v33 = vpop.f32.mrf.mxu0 }
 0x604   :  { %v1507_v34 = vadd.f32 %v2001_v29, %v1506_v33 }
 0x605   :  { %v2318_v35 = vpop.f32.mrf.mxu0 }
 0x606   :  { %v1513_v38 = vadd.f32 %v2461_v13, %v1507_v34 }
 0x608   :  { %v1514_v39 = vadd.f32 %v1513_v38, %v1512_v37 }
 0x60a   :  { %v1515_v40 = vrot.slane %v1514_v39, 4 }
 0x60c   :  { %v1516_v41 = vadd.f32 %v1515_v40, %v1514_v39 }
 0x60e   :  { %v1517_v42 = vrot.slane %v1516_v41, 2 }
 0x610   :  { %v1518_v43 = vadd.f32 %v1517_v42, %v1516_v41 }
 0x612   :  { %v1519_v11 = vrot.slane %v1518_v43, 1 }
 0x614   :  { %v1520_v44 = vadd.f32 %v1519_v11, %v1518_v43 }
 0x616   :  { %v1521_v45 = vmul.f32 0.0625, %v1520_v44 }
 0x618   :  { %v1522_v0 = vsub.f32 %v1512_v37, %v1521_v45  ;;  %v1523_v46 = vsub.f32 %v1513_v38, %v1521_v45  ;;  %v2028_v37 = vld [vmem:[#allocation14] ss:$0 sm:$0xff] }
 0x61a   :  { %v1524_v47 = vmul.f32 %v1522_v0, %v1522_v0  ;;  %v1525_v48 = vmul.f32 %v1523_v46, %v1523_v46 }
 0x61c   :  { %v1526_v49 = vadd.f32 %v1525_v48, %v1524_v47 }
 0x61e   :  { %v1527_v50 = vrot.slane %v1526_v49, 4 }
 0x620   :  { %v1528_v51 = vadd.f32 %v1527_v50, %v1526_v49 }
 0x622   :  { %v1529_v52 = vrot.slane %v1528_v51, 2 }
 0x624   :  { %v1530_v53 = vadd.f32 %v1529_v52, %v1528_v51 }
 0x626   :  { %v1531_v54 = vrot.slane %v1530_v53, 1 }
 0x628   :  { %v1532_v55 = vadd.f32 %v1531_v54, %v1530_v53 }
 0x62a   :  { %v1533_v56 = vmul.f32 0.0625, %v1532_v55 }
 0x62c   :  { %v1534_v57 = vadd.f32 1e-05, %v1533_v56 }
 0x62e   :  { %2456 = vrsqrt.f32 %v1534_v57 }
 0x63b   :  { %v2457_v58 = vpop.eup %2456 }
 0x63c   :  { %v1536_v60 = vmul.f32 %v2457_v58, %v1522_v0  ;;  %v1537_v61 = vmul.f32 %v2457_v58, %v1523_v46 }
 0x63e   :  { %v1544_v1 = vmul.f32 %v2010_v59, %v1536_v60  ;;  %v1545_v2 = vmul.f32 %v2010_v59, %v1537_v61 }
 0x640   :  { %v1552_v62 = vadd.f32 %v2011_v63, %v1544_v1  ;;  %v1553_v3 = vadd.f32 %v2011_v63, %v1545_v2  ;;  %v2045_v2 = vld [vmem:[%s3038_s12] ss:$0 sm:$0xff] }
 0x642   :  { %v1554_v4 = vpack.c.bf16 %v1553_v3, %v1552_v62 }
 0x644   :  { %1696 = vmatmul.mubr.bf16.vlgmr.msra.gmra.mxu1 %v1554_v4  ;;  %v2046_v4 = vld [vmem:[%s3039_s13] ss:$0 sm:$0xff] }
 0x704   :  { %v1697_v18 = vpop.f32.mrf.mxu1 }
 0x705   :  { %v1698_v25 = vadd.f32 %v1697_v18, %v1576_v20 }
 0x706   :  { %v1699_v21 = vpop.f32.mrf.mxu1 }
 0x707   :  { %v1700_v23 = vadd.f32 %v1699_v21, %v1580_v19  ;;  %v1706_v31 = vmax.f32 %v1698_v25, 0.0 }
 0x708   :  { %v1701_v22 = vpop.f32.mrf.mxu1 }
 0x709   :  { %v1702_v24 = vadd.f32 %v1701_v22, %v1576_v20  ;;  %v1707_v29 = vmax.f32 %v1700_v23, 0.0 }
 0x70a   :  { %v1703_v26 = vpop.f32.mrf.mxu1 }
 0x70b   :  { %v1704_v27 = vadd.f32 %v1703_v26, %v1580_v19  ;;  %v1708_v28 = vmax.f32 %v1702_v24, 0.0 }
 0x70d   :  { %v1709_v30 = vmax.f32 %v1704_v27, 0.0  ;;  %v1710_v33 = vpack.c.bf16 %v1708_v28, %v1706_v31 }
 0x70f   :  { %v1711_v32 = vpack.c.bf16 %v1709_v30, %v1707_v29 }
 0x711   :  { %1879 = vmatprep.mubr.bf16.mxu0 %v1711_v32 }
 0x712   :  { %1880 = vmatmul.mubr.bf16.vlgmr.msra.gmra.mxu0 %v1710_v33 }
 0x7d2   :  { %v2137_v34 = vpop.f32.mrf.mxu0 }
 0x7d4   :  { %v2138_v35 = vpop.f32.mrf.mxu0 }
 0x7d5   :  { %v2139_v36 = vadd.f32 %v2138_v35, %v2137_v34 }
 0x7d6   :  { %v2140_v13 = vpop.f32.mrf.mxu0 }
 0x7d7   :  { %v1882_v39 = vadd.f32 %v2139_v36, %v2028_v37 }
 0x7d8   :  { %v2141_v38 = vpop.f32.mrf.mxu0 }
 0x7d9   :  { %v2142_v40 = vadd.f32 %v2141_v38, %v2140_v13  ;;  %v1890_v42 = vadd.f32 %v1882_v39, %v1552_v62 }
 0x7db   :  { %v1885_v41 = vadd.f32 %v2142_v40, %v2028_v37 }
 0x7dd   :  { %v1891_v43 = vadd.f32 %v1885_v41, %v1553_v3 }
 0x7df   :  { %v1892_v11 = vadd.f32 %v1891_v43, %v1890_v42 }
 0x7e1   :  { %v1893_v44 = vrot.slane %v1892_v11, 4 }
 0x7e3   :  { %v1894_v45 = vadd.f32 %v1893_v44, %v1892_v11 }
 0x7e5   :  { %v1895_v0 = vrot.slane %v1894_v45, 2 }
 0x7e7   :  { %v1896_v46 = vadd.f32 %v1895_v0, %v1894_v45 }
 0x7e9   :  { %v1897_v47 = vrot.slane %v1896_v46, 1 }
 0x7eb   :  { %v1898_v48 = vadd.f32 %v1897_v47, %v1896_v46 }
 0x7ed   :  { %v1899_v49 = vmul.f32 0.0625, %v1898_v48 }
 0x7ef   :  { %v1900_v50 = vsub.f32 %v1890_v42, %v1899_v49  ;;  %v1901_v51 = vsub.f32 %v1891_v43, %v1899_v49 }
 0x7f1   :  { %v1902_v52 = vmul.f32 %v1900_v50, %v1900_v50  ;;  %v1903_v53 = vmul.f32 %v1901_v51, %v1901_v51 }
 0x7f3   :  { %v1904_v54 = vadd.f32 %v1903_v53, %v1902_v52 }
 0x7f5   :  { %v1905_v55 = vrot.slane %v1904_v54, 4 }
 0x7f7   :  { %v1906_v56 = vadd.f32 %v1905_v55, %v1904_v54 }
 0x7f9   :  { %v1907_v57 = vrot.slane %v1906_v56, 2 }
 0x7fb   :  { %v1908_v58 = vadd.f32 %v1907_v57, %v1906_v56 }
 0x7fd   :  { %v1909_v59 = vrot.slane %v1908_v58, 1 }
 0x7ff   :  { %v1910_v60 = vadd.f32 %v1909_v59, %v1908_v58 }
 0x801   :  { %v1911_v61 = vmul.f32 0.0625, %v1910_v60 }
 0x803   :  { %v1912_v63 = vadd.f32 1e-05, %v1911_v61 }
 0x805   :  { %2458 = vrsqrt.f32 %v1912_v63 }
 0x812   :  { %v2459_v1 = vpop.eup %2458 }
 0x813   :  { %v1915_v62 = vmul.f32 %v2459_v1, %v1901_v51  ;;  %v1914_v3 = vmul.f32 %v2459_v1, %v1900_v50 }
 0x815   :  { %v1922_v5 = vmul.f32 %v2045_v2, %v1914_v3  ;;  %v1923_v6 = vmul.f32 %v2045_v2, %v1915_v62 }
 0x817   :  { %v1930_v7 = vadd.f32 %v2046_v4, %v1922_v5  ;;  %v1931_v8 = vadd.f32 %v2046_v4, %v1923_v6 }
 0x819   :  { %1932 = vst [vmem:[#allocation16] sm:$0xff] %v1930_v7  ;;  %1933 = vst [vmem:[#allocation16 + $0x8] sm:$0xff] %v1931_v8 }
 0x81a   :  { %2633 = shalt.err (!%p2630_p2)
}
 0x81b   :  { %1945 = dma.vmem_to_hbm [thread:$0]  %s1940_s28, 256, %s3040_s14, [#allocation4], %s2660_s29, %s2660_s29, %s2661_s30  }
 0x81c   :  { %2652 = dma.done.wait [#allocation4], 256  }
 0x81d   :  { %2653 = vsyncadd [#allocation4], 4294967040 }
 0x81e   :  { %1949 = vsyncpa [#allocation3], 1 }
 0x81f   :  { %1950 = vsyncpa [#allocation6], 1 }
 0x820   :  { %1951 = vsyncpa [#allocation9], 1 }
 0x821   :  { %1952 = vsyncpa [#allocation12], 1 }
 0x822   :  { %1953 = vsyncpa [#allocation15], 1 }
 0x823   :  { %1954 = vsyncpa [#allocation4], 1 }

</bundles_post_ra>
